<compile_context>
chip_gen: v6e
topology: v6e:2x2x1
jax: 0.10.0
libtpu: 0.0.40
codegen_flags: <defaults>
</compile_context>

<pallas_src>
import functools

import jax
import jax.numpy as jnp
from jax.experimental import pallas as pl
from jax.experimental.pallas import tpu as pltpu

_ACT_DTYPE = jnp.bfloat16
_VMEM_LIMIT = 48 * 1024 * 1024


def _compiler_params():
    return pltpu.CompilerParams(
        dimension_semantics=("parallel",),
        vmem_limit_bytes=_VMEM_LIMIT,
    )


# ---------------------------------------------------------------------------
# In-kernel helpers
# ---------------------------------------------------------------------------
def _conv3x3_from_padded(xp_ref, w_ref, H, W):
    """3x3 stride-1 VALID conv over a (H+2, W+2, Cin) padded VMEM ref.

    w_ref is (3, 3*Cin, Cout): per kh the 3 kw taps are folded into the
    contraction (K = 3*Cin) so each kh is a single MXU matmul.
    Returns a f32 (H*W, Cout) accumulator.
    """
    Cin = xp_ref.shape[-1]
    Cout = w_ref.shape[-1]
    acc = jnp.zeros((H * W, Cout), jnp.float32)
    for kh in range(3):
        rows = xp_ref[kh:kh + H, :, :]                              # (H, W+2, Cin)
        slab = jnp.concatenate(
            [rows[:, kw:kw + W, :] for kw in range(3)], axis=-1)    # (H, W, 3*Cin)
        acc = acc + jnp.dot(slab.reshape(H * W, 3 * Cin), w_ref[kh],
                            preferred_element_type=jnp.float32)
    return acc


def _fill_padded(dst_ref, src):
    """Zero a (H+2, W+2, C) VMEM scratch and write `src` into its interior."""
    H, W = src.shape[0], src.shape[1]
    dst_ref[...] = jnp.zeros(dst_ref.shape, dst_ref.dtype)
    dst_ref[1:H + 1, 1:W + 1, :] = src.astype(dst_ref.dtype)


# ---------------------------------------------------------------------------
# Kernels
# ---------------------------------------------------------------------------
def fused_block_kernel(x_ref, w1_ref, s1_ref, b1_ref, w2_ref, s2_ref, b2_ref,
                       out_ref, xp_ref, hp_ref):
    """Whole stride-1 BasicBlock: conv3x3+BN+ReLU -> conv3x3+BN -> +x -> ReLU."""
    _, H, W, C = x_ref.shape
    x = x_ref[0]                                                    # (H, W, C) bf16
    _fill_padded(xp_ref, x)
    h = _conv3x3_from_padded(xp_ref, w1_ref, H, W)                  # (H*W, C) f32
    h = jnp.maximum(h * s1_ref[...] + b1_ref[...], 0.0)
    _fill_padded(hp_ref, h.reshape(H, W, C))                        # h stays in VMEM
    y = _conv3x3_from_padded(hp_ref, w2_ref, H, W)
    y = y * s2_ref[...] + b2_ref[...]
    y = y + x.reshape(H * W, C).astype(jnp.float32)                 # identity
    y = jnp.maximum(y, 0.0)
    out_ref[...] = y.reshape(1, H, W, C).astype(out_ref.dtype)


def conv3x3_add_kernel(x_ref, w_ref, s_ref, b_ref, id_ref, out_ref, xp_ref):
    """3x3/s1 conv + BN + residual add + ReLU (second conv of downsample blocks)."""
    _, H, W, _ = x_ref.shape
    Cout = out_ref.shape[-1]
    _fill_padded(xp_ref, x_ref[0])
    y = _conv3x3_from_padded(xp_ref, w_ref, H, W)
    y = y * s_ref[...] + b_ref[...]
    y = y + id_ref[0].reshape(H * W, Cout).astype(jnp.float32)
    y = jnp.maximum(y, 0.0)
    out_ref[...] = y.reshape(1, H, W, Cout).astype(out_ref.dtype)


def matmul_bn_kernel(p_ref, w_ref, s_ref, b_ref, out_ref, *, relu):
    """(im2col patches) @ W + folded BN (+ optional ReLU) -- strided convs."""
    y = jnp.dot(p_ref[0], w_ref[...], preferred_element_type=jnp.float32)
    y = y * s_ref[...] + b_ref[...]
    if relu:
        y = jnp.maximum(y, 0.0)
    out_ref[...] = y[None].astype(out_ref.dtype)


def maxpool_kernel(taps_ref, out_ref):
    """Max over the 9 pre-gathered 3x3 taps."""
    m = taps_ref[0, 0]
    for t in range(1, taps_ref.shape[1]):
        m = jnp.maximum(m, taps_ref[0, t])
    out_ref[...] = m[None].astype(out_ref.dtype)


def head_kernel(x_ref, w_ref, b_ref, out_ref):
    """Global average pool + fully-connected layer."""
    hw = x_ref.shape[1]
    pooled = jnp.sum(x_ref[0].astype(jnp.float32), axis=0, keepdims=True) * (1.0 / hw)
    y = jnp.dot(pooled, w_ref[...], preferred_element_type=jnp.float32) + b_ref[...]
    out_ref[...] = y[None].astype(out_ref.dtype)


# ---------------------------------------------------------------------------
# pallas_call wrappers
# ---------------------------------------------------------------------------
def fused_basic_block(x, w1, s1, b1, w2, s2, b2):
    N, H, W, C = x.shape
    vspec = pl.BlockSpec((1, C), lambda n: (0, 0))
    return pl.pallas_call(
        fused_block_kernel,
        out_shape=jax.ShapeDtypeStruct((N, H, W, C), x.dtype),
        grid_spec=pltpu.PrefetchScalarGridSpec(
            num_scalar_prefetch=0,
            grid=(N,),
            in_specs=[
                pl.BlockSpec((1, H, W, C), lambda n: (n, 0, 0, 0)),
                pl.BlockSpec((3, 3 * C, C), lambda n: (0, 0, 0)),
                vspec, vspec,
                pl.BlockSpec((3, 3 * C, C), lambda n: (0, 0, 0)),
                vspec, vspec,
            ],
            out_specs=pl.BlockSpec((1, H, W, C), lambda n: (n, 0, 0, 0)),
            scratch_shapes=[
                pltpu.VMEM((H + 2, W + 2, C), x.dtype),
                pltpu.VMEM((H + 2, W + 2, C), x.dtype),
            ],
        ),
        compiler_params=_compiler_params(),
    )(x, w1, s1, b1, w2, s2, b2)


def conv3x3_bn_add_relu(x, w_packed, scale, bias, identity):
    N, H, W, Cin = x.shape
    Cout = w_packed.shape[-1]
    return pl.pallas_call(
        conv3x3_add_kernel,
        out_shape=jax.ShapeDtypeStruct((N, H, W, Cout), x.dtype),
        grid_spec=pltpu.PrefetchScalarGridSpec(
            num_scalar_prefetch=0,
            grid=(N,),
            in_specs=[
                pl.BlockSpec((1, H, W, Cin), lambda n: (n, 0, 0, 0)),
                pl.BlockSpec((3, 3 * Cin, Cout), lambda n: (0, 0, 0)),
                pl.BlockSpec((1, Cout), lambda n: (0, 0)),
                pl.BlockSpec((1, Cout), lambda n: (0, 0)),
                pl.BlockSpec((1, H, W, Cout), lambda n: (n, 0, 0, 0)),
            ],
            out_specs=pl.BlockSpec((1, H, W, Cout), lambda n: (n, 0, 0, 0)),
            scratch_shapes=[pltpu.VMEM((H + 2, W + 2, Cin), x.dtype)],
        ),
        compiler_params=_compiler_params(),
    )(x, w_packed, scale, bias, identity)


def conv_matmul_bn(patches, w2d, scale, bias, *, relu):
    N, M, K = patches.shape
    Cout = w2d.shape[-1]
    kernel = functools.partial(matmul_bn_kernel, relu=relu)
    return pl.pallas_call(
        kernel,
        out_shape=jax.ShapeDtypeStruct((N, M, Cout), _ACT_DTYPE),
        grid_spec=pltpu.PrefetchScalarGridSpec(
            num_scalar_prefetch=0,
            grid=(N,),
            in_specs=[
                pl.BlockSpec((1, M, K), lambda n: (n, 0, 0)),
                pl.BlockSpec((K, Cout), lambda n: (0, 0)),
                pl.BlockSpec((1, Cout), lambda n: (0, 0)),
                pl.BlockSpec((1, Cout), lambda n: (0, 0)),
            ],
            out_specs=pl.BlockSpec((1, M, Cout), lambda n: (n, 0, 0)),
        ),
        compiler_params=_compiler_params(),
    )(patches, w2d, scale, bias)


def maxpool_3x3_s2_p1(x):
    N, H, W, C = x.shape
    Ho = (H - 1) // 2 + 1
    Wo = (W - 1) // 2 + 1
    xp = jnp.pad(x, ((0, 0), (1, 1), (1, 1), (0, 0)), constant_values=-jnp.inf)
    taps = jnp.stack(
        [xp[:, kh:kh + 2 * Ho:2, kw:kw + 2 * Wo:2, :].reshape(N, Ho * Wo, C)
         for kh in range(3) for kw in range(3)], axis=1)            # (N, 9, Ho*Wo, C)
    out = pl.pallas_call(
        maxpool_kernel,
        out_shape=jax.ShapeDtypeStruct((N, Ho * Wo, C), x.dtype),
        grid_spec=pltpu.PrefetchScalarGridSpec(
            num_scalar_prefetch=0,
            grid=(N,),
            in_specs=[pl.BlockSpec((1, 9, Ho * Wo, C), lambda n: (n, 0, 0, 0))],
            out_specs=pl.BlockSpec((1, Ho * Wo, C), lambda n: (n, 0, 0)),
        ),
        compiler_params=_compiler_params(),
    )(taps)
    return out.reshape(N, Ho, Wo, C)


def avgpool_fc(x, w, b):
    N, H, W, C = x.shape
    ncls = w.shape[-1]
    xf = x.reshape(N, H * W, C)
    out = pl.pallas_call(
        head_kernel,
        out_shape=jax.ShapeDtypeStruct((N, 1, ncls), jnp.float32),
        grid_spec=pltpu.PrefetchScalarGridSpec(
            num_scalar_prefetch=0,
            grid=(N,),
            in_specs=[
                pl.BlockSpec((1, H * W, C), lambda n: (n, 0, 0)),
                pl.BlockSpec((C, ncls), lambda n: (0, 0)),
                pl.BlockSpec((1, ncls), lambda n: (0, 0)),
            ],
            out_specs=pl.BlockSpec((1, 1, ncls), lambda n: (n, 0, 0)),
        ),
        compiler_params=_compiler_params(),
    )(xf, w.astype(jnp.float32), b.reshape(1, ncls).astype(jnp.float32))
    return out[:, 0, :]


# ---------------------------------------------------------------------------
# Wrapper-level glue (BN folding, weight packing, im2col for strided convs)
# ---------------------------------------------------------------------------
def fold_bn(gamma, beta, mean, var, eps=1e-5):
    scale = (gamma / jnp.sqrt(var + eps)).astype(jnp.float32)
    bias = (beta - mean * scale).astype(jnp.float32)
    c = scale.shape[0]
    return scale.reshape(1, c), bias.reshape(1, c)


def _pack3x3(w):
    kh, kw, cin, cout = w.shape
    return w.reshape(kh, kw * cin, cout).astype(_ACT_DTYPE)


def _im2col(x, kh_sz, kw_sz, stride, pad):
    """Wrapper-side im2col (plain XLA strided slices) for strided convs."""
    N, H, W, C = x.shape
    Ho = (H + 2 * pad - kh_sz) // stride + 1
    Wo = (W + 2 * pad - kw_sz) // stride + 1
    xp = jnp.pad(x, ((0, 0), (pad, pad), (pad, pad), (0, 0))) if pad else x
    cols = [xp[:, kh:kh + stride * Ho:stride, kw:kw + stride * Wo:stride, :]
            for kh in range(kh_sz) for kw in range(kw_sz)]
    patches = jnp.concatenate(cols, axis=-1).reshape(N, Ho * Wo, kh_sz * kw_sz * C)
    return patches, Ho, Wo


def basic_block(x, p, stride):
    N, H, W, Cin = x.shape
    Cout = p["w1"].shape[-1]
    s1, b1 = fold_bn(*p["bn1"])
    s2, b2 = fold_bn(*p["bn2"])
    w2p = _pack3x3(p["w2"])
    if stride == 1 and p["shortcut"] is None:
        # fully fused: both convs, BN, residual and ReLUs in one pallas_call
        return fused_basic_block(x, _pack3x3(p["w1"]), s1, b1, w2p, s2, b2)
    # downsample block: strided conv1 + 1x1 strided shortcut via im2col matmul,
    # then stride-1 conv2 + BN + residual + ReLU fused in Pallas.
    patches, Ho, Wo = _im2col(x, 3, 3, stride, 1)
    h = conv_matmul_bn(patches,
                       p["w1"].reshape(9 * Cin, Cout).astype(_ACT_DTYPE),
                       s1, b1, relu=True).reshape(N, Ho, Wo, Cout)
    ss, sb = fold_bn(*p["shortcut"]["bn"])
    sp, _, _ = _im2col(x, 1, 1, stride, 0)
    idn = conv_matmul_bn(sp,
                         p["shortcut"]["w"].reshape(Cin, Cout).astype(_ACT_DTYPE),
                         ss, sb, relu=False).reshape(N, Ho, Wo, Cout)
    return conv3x3_bn_add_relu(h, w2p, s2, b2, idn)


def resnet_forward(x_nchw, params):
    x = jnp.transpose(x_nchw, (0, 2, 3, 1)).astype(_ACT_DTYPE)      # NCHW -> NHWC
    N = x.shape[0]
    # stem: 7x7/s2/p3 conv + BN + ReLU, then 3x3/s2/p1 maxpool
    s, b = fold_bn(*params["stem"]["bn"])
    patches, Ho, Wo = _im2col(x, 7, 7, 2, 3)
    cout = params["stem"]["w"].shape[-1]
    h = conv_matmul_bn(patches,
                       params["stem"]["w"].reshape(7 * 7 * 3, cout).astype(_ACT_DTYPE),
                       s, b, relu=True).reshape(N, Ho, Wo, cout)
    h = maxpool_3x3_s2_p1(h)
    # residual stages
    for stage in params["stages"]:
        for i, blk in enumerate(stage["blocks"]):
            h = basic_block(h, blk, stage["stride"] if i == 0 else 1)
    # global average pool + fc
    return avgpool_fc(h, params["fc"]["w"], params["fc"]["b"])


# ---------------------------------------------------------------------------
# Deterministic parameter init + smoke test
# ---------------------------------------------------------------------------
def init_params(key, num_blocks=(1, 1, 1, 1), num_classes=5):
    keys = iter(jax.random.split(key, 128))

    def conv_w(kh, kw, cin, cout):
        fan = kh * kw * cin
        return jax.random.normal(next(keys), (kh, kw, cin, cout),
                                 jnp.float32) * jnp.sqrt(2.0 / fan)

    def bn(c):
        gamma = jax.random.uniform(next(keys), (c,), jnp.float32, 0.8, 1.2)
        beta = 0.05 * jax.random.normal(next(keys), (c,), jnp.float32)
        mean = 0.05 * jax.random.normal(next(keys), (c,), jnp.float32)
        var = jax.random.uniform(next(keys), (c,), jnp.float32, 0.8, 1.2)
        return (gamma, beta, mean, var)

    params = {
        "stem": {"w": conv_w(7, 7, 3, 64), "bn": bn(64)},
        "stages": [],
        # fc weight stored transposed relative to torch Linear: (512, num_classes)
        "fc": {"w": 0.05 * jax.random.normal(next(keys), (512, num_classes), jnp.float32),
               "b": 0.01 * jax.random.normal(next(keys), (num_classes,), jnp.float32)},
    }
    cin = 64
    for nb, cout, stride in zip(num_blocks, (64, 128, 256, 512), (1, 2, 2, 2)):
        blocks = []
        for b_idx in range(nb):
            s = stride if b_idx == 0 else 1
            blk = {"w1": conv_w(3, 3, cin, cout), "bn1": bn(cout),
                   "w2": conv_w(3, 3, cout, cout), "bn2": bn(cout),
                   "shortcut": None}
            if s != 1 or cin != cout:
                blk["shortcut"] = {"w": conv_w(1, 1, cin, cout), "bn": bn(cout)}
            blocks.append(blk)
            cin = cout
        params["stages"].append({"stride": stride, "blocks": blocks})
    return params


if __name__ == "__main__":
    key = jax.random.PRNGKey(0)
    kx, kp = jax.random.split(key)

    N, C, H, W = 2, 3, 64, 64
    x = jax.random.normal(kx, (N, C, H, W), jnp.float32)
    params = init_params(kp, num_blocks=(1, 1, 1, 1), num_classes=5)

    logits = resnet_forward(x, params)
    logits = jax.block_until_ready(logits)
    assert logits.shape == (N, 5), logits.shape
    assert bool(jnp.all(jnp.isfinite(logits)))
    print("KERNEL_OK")
</pallas_src>

<mosaic_0001>
module attributes {stable_mosaic.version = 11 : i64} {
  func.func @matmul_bn_kernel(%arg0: i32, %arg1: memref<1x1024x147xbf16, #tpu.memory_space<vmem>>, %arg2: memref<147x64xbf16, #tpu.memory_space<vmem>>, %arg3: memref<1x64xf32, #tpu.memory_space<vmem>>, %arg4: memref<1x64xf32, #tpu.memory_space<vmem>>, %arg5: memref<1x1024x64xbf16, #tpu.memory_space<vmem>>) attributes {dimension_semantics = [#tpu.dimension_semantics<parallel>], iteration_bounds = array<i64: 2>, scalar_prefetch = 0 : i64, scratch_operands = 0 : i64, tpu.core_type = #tpu.core_type<tc>, window_params = [{transform_indices = @transform_0, window_bounds = array<i64: 1, 1024, 147>}, {pipeline_mode = #tpu.pipeline_mode<synchronous>, transform_indices = @transform_1, window_bounds = array<i64: 147, 64>}, {pipeline_mode = #tpu.pipeline_mode<synchronous>, transform_indices = @transform_2, window_bounds = array<i64: 1, 64>}, {pipeline_mode = #tpu.pipeline_mode<synchronous>, transform_indices = @transform_3, window_bounds = array<i64: 1, 64>}, {transform_indices = @transform_4, window_bounds = array<i64: 1, 1024, 64>}]} {
    %c0 = arith.constant 0 : index
    %c0_0 = arith.constant 0 : index
    %c0_1 = arith.constant 0 : index
    %0 = vector.load %arg1[%c0, %c0_0, %c0_1] : memref<1x1024x147xbf16, #tpu.memory_space<vmem>>, vector<1x1024x147xbf16>
    %1 = vector.shape_cast %0 : vector<1x1024x147xbf16> to vector<1024x147xbf16>
    %c0_2 = arith.constant 0 : index
    %c0_3 = arith.constant 0 : index
    %2 = vector.load %arg2[%c0_2, %c0_3] : memref<147x64xbf16, #tpu.memory_space<vmem>>, vector<147x64xbf16>
    %cst = arith.constant dense<0.000000e+00> : vector<1024x64xf32>
    %3 = tpu.matmul %1, %2, %cst {dimension_numbers = #tpu.dot_dimension_numbers<[1], [0], [0], [1], [0, 0, 1, 1], [], []>} : vector<1024x147xbf16>, vector<147x64xbf16>, vector<1024x64xf32> -> vector<1024x64xf32>
    %c0_4 = arith.constant 0 : index
    %c0_5 = arith.constant 0 : index
    %4 = vector.load %arg3[%c0_4, %c0_5] : memref<1x64xf32, #tpu.memory_space<vmem>>, vector<1x64xf32>
    %5 = vector.broadcast %4 : vector<1x64xf32> to vector<1024x64xf32>
    %6 = arith.mulf %3, %5 : vector<1024x64xf32>
    %c0_6 = arith.constant 0 : index
    %c0_7 = arith.constant 0 : index
    %7 = vector.load %arg4[%c0_6, %c0_7] : memref<1x64xf32, #tpu.memory_space<vmem>>, vector<1x64xf32>
    %8 = vector.broadcast %7 : vector<1x64xf32> to vector<1024x64xf32>
    %9 = arith.addf %6, %8 : vector<1024x64xf32>
    %cst_8 = arith.constant 0.000000e+00 : f32
    %10 = vector.broadcast %cst_8 : f32 to vector<1024x64xf32>
    %11 = arith.maximumf %9, %10 : vector<1024x64xf32>
    %12 = vector.shape_cast %11 : vector<1024x64xf32> to vector<1x1024x64xf32>
    %13 = arith.truncf %12 : vector<1x1024x64xf32> to vector<1x1024x64xbf16>
    %c0_9 = arith.constant 0 : index
    %c0_10 = arith.constant 0 : index
    %c0_11 = arith.constant 0 : index
    %14 = vector.load %arg5[%c0_9, %c0_10, %c0_11] : memref<1x1024x64xbf16, #tpu.memory_space<vmem>>, vector<1x1024x64xbf16>
    tpu.vector_store %arg5[%c0_9, %c0_10, %c0_11], %13 {strides = array<i32>} : memref<1x1024x64xbf16, #tpu.memory_space<vmem>>, vector<1x1024x64xbf16>,
    return
  }
  func.func @transform_0(%arg0: i32) -> (i32, i32, i32) {
    %c0_i32 = arith.constant 0 : i32
    %c0_i32_0 = arith.constant 0 : i32
    %c0_i32_1 = arith.constant 0 : i32
    return %arg0, %c0_i32, %c0_i32_0 : i32, i32, i32
  }
  func.func @transform_1(%arg0: i32) -> (i32, i32) {
    %c0_i32 = arith.constant 0 : i32
    %c0_i32_0 = arith.constant 0 : i32
    %c0_i32_1 = arith.constant 0 : i32
    return %c0_i32, %c0_i32_0 : i32, i32
  }
  func.func @transform_2(%arg0: i32) -> (i32, i32) {
    %c0_i32 = arith.constant 0 : i32
    %c0_i32_0 = arith.constant 0 : i32
    %c0_i32_1 = arith.constant 0 : i32
    return %c0_i32, %c0_i32_0 : i32, i32
  }
  func.func @transform_3(%arg0: i32) -> (i32, i32) {
    %c0_i32 = arith.constant 0 : i32
    %c0_i32_0 = arith.constant 0 : i32
    %c0_i32_1 = arith.constant 0 : i32
    return %c0_i32, %c0_i32_0 : i32, i32
  }
  func.func @transform_4(%arg0: i32) -> (i32, i32, i32) {
    %c0_i32 = arith.constant 0 : i32
    %c0_i32_0 = arith.constant 0 : i32
    %c0_i32_1 = arith.constant 0 : i32
    return %arg0, %c0_i32, %c0_i32_0 : i32, i32, i32
  }
}

</mosaic_0001>

<bundles_post_ra>
// kernel: tpu_custom_call.1
= control target key start
LH: loop header
LB: loop body
LE: loop exit
PB: predicated region body
PF: predicated region fallthrough
CT: control target
= control target key end

     0   :  { %s3544_s15 = smov 0   ;;  %s4339_s0 = inlined_call_operand.vmem [shape: bf16[2,1024,147], index: 0, kind: input, shape index: {}]   ;;  %s4340_s1 = inlined_call_operand.vmem [shape: bf16[147,64], index: 1, kind: input, shape index: {}]   ;;  %s4341_s2 = inlined_call_operand.vmem [shape: f32[1,64], index: 2, kind: input, shape index: {}]   ;;  %s4342_s3 = inlined_call_operand.vmem [shape: f32[1,64], index: 3, kind: input, shape index: {}]   ;;  %s4343_s4 = inlined_call_operand.vmem [shape: bf16[2,1024,64], index: 4, kind: output, shape index: {}]  }
   0x1 LB: > { %s2818_s16 = sadd.s32 4294967295, %s3515_s15   ;;  %p2822_p0 = scmp.ge.s32.totalorder %s3515_s15, 1  ;;  %s3515_s15 = sphi %s3544_s15, %s14_s15  }
   0x2   : > { %p162_p1 = scmp.lt.s32.totalorder %s3515_s15, 3 }
   0x4   : > { %p163_p2 = pnand %p2822_p0, %p162_p1 }
   0x5   : > { %p188_p3 = scmp.lt.s32.totalorder (!%p163_p2), %s2818_s16, 1 }
   0x6   : > { %166 = sbr.rel (%p163_p2) target bundleno = 506 (0x1fa), region = 36 }
   0xb   : > { %v3321_v0 = vld [vmem:[%s4340_s1 + $0x38] sm:$0xff]   ;;  %v3517_v1 = vmov 0   ;;  %v3322_v2 = vld [vmem:[%s4340_s1 + $0x30] sm:$0xff]   ;;  %v3323_v3 = vld [vmem:[%s4340_s1 + $0x28] sm:$0xff]   ;;  %s4345_s16 = smov (!%p188_p3, %s2818_s16), 1  ;;  %vm979_vm0 = vcmask 154624  }
   0xc   : > { %1179 = vmatprep.subr.bf16.mxu0 %v3517_v1  ;;  %3291 = vmatprep.subr.bf16.mxu1 %v3517_v1  ;;  %v3324_v4 = vld [vmem:[%s4340_s1 + $0x20] sm:$0xff]   ;;  %s3161_s25 = sshll.u32 %s4345_s16, 10  ;;  %v3325_v5 = vld [vmem:[%s4340_s1 + $0x18] sm:$0xff]   ;;  %v3326_v8 = vld [vmem:[%s4340_s1 + $0x10] sm:$0xff]   ;;  %vm1172_vm1 = vcmask 1040384   ;;  %vm1173_vm2 = vcmask 1041408  }
   0xd   : > { %1180 = vmatpush1.bf16.msra.mxu0 %v3321_v0  ;;  %3301 = vmatpush1.bf16.msra.mxu1 %v3321_v0  ;;  %s3570_s28 = scalar_lea.vmem %s4339_s0, %s3161_s25  ;;  %v3327_v9 = vld [vmem:[%s4340_s1 + $0x8] sm:$0xff]   ;;  %v3518_v10 = vmov 65535   ;;  %v3328_v12 = vld [vmem:[%s4340_s1] sm:$0xff]   ;;  %s3162_s21 = sshll.u32 %s4345_s16, 9  ;;  %vm2634_vm3 = vcmask 519168  }
   0xe   : > { %1181 = vmatprep.subr.bf16.mxu0 %v3517_v1  ;;  %3292 = vmatprep.subr.bf16.mxu1 %v3517_v1  ;;  %v3333_v6 = vld [vmem:[%s3570_s28 + $0x4] ss:$8 sps:$4 sm:$0xff]   ;;  %v1174_v11 = vsel %vm1172_vm1, 4294967295, %v3518_v10  ;;  %v3329_v13 = vld [vmem:[%s4340_s1 + $0x48] ss:$0 sps:$4 sm:$0x33]   ;;  %s3772_s16 = scalar_lea.vmem %s4343_s4, %s3162_s21 }
   0xf   : > { %v3336_v7 = vld [vmem:[%s3570_s28 + $0x204] ss:$8 sps:$4 sm:$0xff]   ;;  %2965 = vmatprep.mubr.msk.bf16.mxu0 %vm979_vm0, %v3333_v6  ;;  %v1175_v14 = vsel %vm1173_vm2, %v1174_v11, 0  ;;  %v3331_v17 = vld [vmem:[%s3570_s28] ss:$8 sps:$4 sm:$0xff]  }
  0x10   : > { %2997 = vmatprep.mubr.msk.bf16.mxu1 %vm979_vm0, %v3336_v7  ;;  %v1177_v15 = vand.u32 %v3329_v13, %v1175_v14  ;;  %v3330_v16 = vld [vmem:[%s4340_s1 + $0x40] sm:$0xff]   ;;  %v3337_v19 = vld [vmem:[%s3570_s28 + $0x14] ss:$8 sps:$4 sm:$0xff]   ;;  %v3341_v21 = vld [vmem:[%s3570_s28 + $0x10] ss:$8 sps:$4 sm:$0xff]  }
  0x11   : > { %1182 = vmatpush1.bf16.msra.mxu0 %v3322_v2  ;;  %3302 = vmatpush1.bf16.msra.mxu1 %v3322_v2  ;;  %v3334_v18 = vld [vmem:[%s3570_s28 + $0x200] ss:$8 sps:$4 sm:$0xff]   ;;  %v3339_v20 = vld [vmem:[%s3570_s28 + $0x214] ss:$8 sps:$4 sm:$0xff]   ;;  %v3342_v22 = vld [vmem:[%s3570_s28 + $0x210] ss:$8 sps:$4 sm:$0xff]  }
  0x12   : > { %1183 = vmatprep.subr.bf16.mxu0 %v3517_v1  ;;  %3293 = vmatprep.subr.bf16.mxu1 %v3517_v1  ;;  %v3343_v23 = vld [vmem:[%s3570_s28 + $0x24] ss:$8 sps:$4 sm:$0xff]   ;;  %v3347_v25 = vld [vmem:[%s3570_s28 + $0x20] ss:$8 sps:$4 sm:$0xff]   ;;  %v3349_v27 = vld [vmem:[%s3570_s28 + $0x34] ss:$8 sps:$4 sm:$0xff]  }
  0x13   : > { %v3345_v24 = vld [vmem:[%s3570_s28 + $0x224] ss:$8 sps:$4 sm:$0xff]   ;;  %v3348_v26 = vld [vmem:[%s3570_s28 + $0x220] ss:$8 sps:$4 sm:$0xff]   ;;  %v3351_v28 = vld [vmem:[%s3570_s28 + $0x234] ss:$8 sps:$4 sm:$0xff]  }
  0x14   : > { %v3353_v29 = vld [vmem:[%s3570_s28 + $0x30] ss:$8 sps:$4 sm:$0xff]   ;;  %v3355_v31 = vld [vmem:[%s3570_s28 + $0x44] ss:$8 sps:$4 sm:$0xff]   ;;  %v3359_v33 = vld [vmem:[%s3570_s28 + $0x40] ss:$8 sps:$4 sm:$0xff]  }
  0x15   : > { %1184 = vmatpush1.bf16.msra.mxu0 %v3323_v3  ;;  %3303 = vmatpush1.bf16.msra.mxu1 %v3323_v3  ;;  %v3354_v30 = vld [vmem:[%s3570_s28 + $0x230] ss:$8 sps:$4 sm:$0xff]   ;;  %v3357_v32 = vld [vmem:[%s3570_s28 + $0x244] ss:$8 sps:$4 sm:$0xff]   ;;  %v3360_v34 = vld [vmem:[%s3570_s28 + $0x240] ss:$8 sps:$4 sm:$0xff]  }
  0x16   : > { %1185 = vmatprep.subr.bf16.mxu0 %v3517_v1  ;;  %3294 = vmatprep.subr.bf16.mxu1 %v3517_v1  ;;  %v3361_v35 = vld [vmem:[%s3570_s28 + $0x54] ss:$8 sps:$4 sm:$0xff]   ;;  %v3365_v37 = vld [vmem:[%s3570_s28 + $0x50] ss:$8 sps:$4 sm:$0xff]   ;;  %v3367_v39 = vld [vmem:[%s3570_s28 + $0x64] ss:$8 sps:$4 sm:$0xff]  }
  0x17   : > { %v3363_v36 = vld [vmem:[%s3570_s28 + $0x254] ss:$8 sps:$4 sm:$0xff]   ;;  %v3366_v38 = vld [vmem:[%s3570_s28 + $0x250] ss:$8 sps:$4 sm:$0xff]   ;;  %v3369_v40 = vld [vmem:[%s3570_s28 + $0x264] ss:$8 sps:$4 sm:$0xff]  }
  0x18   : > { %v3371_v41 = vld [vmem:[%s3570_s28 + $0x60] ss:$8 sps:$4 sm:$0xff]   ;;  %v3373_v43 = vld [vmem:[%s3570_s28 + $0x74] ss:$8 sps:$4 sm:$0xff]   ;;  %v3377_v45 = vld [vmem:[%s3570_s28 + $0x70] ss:$8 sps:$4 sm:$0xff]  }
  0x19   : > { %1186 = vmatpush1.bf16.msra.mxu0 %v3324_v4  ;;  %3304 = vmatpush1.bf16.msra.mxu1 %v3324_v4  ;;  %v3372_v42 = vld [vmem:[%s3570_s28 + $0x260] ss:$8 sps:$4 sm:$0xff]   ;;  %v3375_v44 = vld [vmem:[%s3570_s28 + $0x274] ss:$8 sps:$4 sm:$0xff]   ;;  %v3378_v46 = vld [vmem:[%s3570_s28 + $0x270] ss:$8 sps:$4 sm:$0xff]  }
  0x1a   : > { %1187 = vmatprep.subr.bf16.mxu0 %v3517_v1  ;;  %3295 = vmatprep.subr.bf16.mxu1 %v3517_v1  ;;  %v3379_v47 = vld [vmem:[%s3570_s28 + $0x84] ss:$8 sps:$4 sm:$0xff]   ;;  %v3383_v49 = vld [vmem:[%s3570_s28 + $0x80] ss:$8 sps:$4 sm:$0xff]   ;;  %v3385_v51 = vld [vmem:[%s3570_s28 + $0x94] ss:$8 sps:$4 sm:$0xff]  }
  0x1b   : > { %v3381_v48 = vld [vmem:[%s3570_s28 + $0x284] ss:$8 sps:$4 sm:$0xff]   ;;  %v3384_v50 = vld [vmem:[%s3570_s28 + $0x280] ss:$8 sps:$4 sm:$0xff]   ;;  %v3387_v52 = vld [vmem:[%s3570_s28 + $0x294] ss:$8 sps:$4 sm:$0xff]  }
  0x1c   : > { %v3389_v53 = vld [vmem:[%s3570_s28 + $0x90] ss:$8 sps:$4 sm:$0xff]   ;;  %v3391_v55 = vld [vmem:[%s3570_s28 + $0xa4] ss:$8 sps:$4 sm:$0xff]   ;;  %v3395_v57 = vld [vmem:[%s3570_s28 + $0xa0] ss:$8 sps:$4 sm:$0xff]  }
  0x1d   : > { %1188 = vmatpush1.bf16.msra.mxu0 %v3325_v5  ;;  %3305 = vmatpush1.bf16.msra.mxu1 %v3325_v5  ;;  %v3390_v54 = vld [vmem:[%s3570_s28 + $0x290] ss:$8 sps:$4 sm:$0xff]   ;;  %v3393_v56 = vld [vmem:[%s3570_s28 + $0x2a4] ss:$8 sps:$4 sm:$0xff]   ;;  %v3396_v58 = vld [vmem:[%s3570_s28 + $0x2a0] ss:$8 sps:$4 sm:$0xff]  }
  0x1e   : > { %1189 = vmatprep.subr.bf16.mxu0 %v3517_v1  ;;  %3296 = vmatprep.subr.bf16.mxu1 %v3517_v1  ;;  %v3397_v59 = vld [vmem:[%s3570_s28 + $0xb4] ss:$8 sps:$4 sm:$0xff]   ;;  %v3401_v61 = vld [vmem:[%s3570_s28 + $0xb0] ss:$8 sps:$4 sm:$0xff]   ;;  %v3403_v63 = vld [vmem:[%s3570_s28 + $0xc4] ss:$8 sps:$4 sm:$0xff]  }
  0x1f   : > { %v3399_v60 = vld [vmem:[%s3570_s28 + $0x2b4] ss:$8 sps:$4 sm:$0xff]   ;;  %v3402_v62 = vld [vmem:[%s3570_s28 + $0x2b0] ss:$8 sps:$4 sm:$0xff]   ;;  %v3405_v0 = vld [vmem:[%s3570_s28 + $0x2c4] ss:$8 sps:$4 sm:$0xff]  }
  0x20   : > { %v3408_v2 = vld [vmem:[%s3570_s28 + $0x2c0] ss:$8 sps:$4 sm:$0xff]   ;;  %v3409_v3 = vld [vmem:[%s3570_s28 + $0xd4] ss:$8 sps:$4 sm:$0xff]   ;;  %v3413_v5 = vld [vmem:[%s3570_s28 + $0xd0] ss:$8 sps:$4 sm:$0xff]  }
  0x21   : > { %1190 = vmatpush1.bf16.msra.mxu0 %v3326_v8  ;;  %3306 = vmatpush1.bf16.msra.mxu1 %v3326_v8  ;;  %v3411_v4 = vld [vmem:[%s3570_s28 + $0x2d4] ss:$8 sps:$4 sm:$0xff]   ;;  %v3414_v6 = vld [vmem:[%s3570_s28 + $0x2d0] ss:$8 sps:$4 sm:$0xff]   ;;  %v3415_v7 = vld [vmem:[%s3570_s28 + $0xe4] ss:$8 sps:$4 sm:$0xff]  }
  0x22   : > { %1191 = vmatprep.subr.bf16.mxu0 %v3517_v1  ;;  %3297 = vmatprep.subr.bf16.mxu1 %v3517_v1  ;;  %v3417_v8 = vld [vmem:[%s3570_s28 + $0x2e4] ss:$8 sps:$4 sm:$0xff]   ;;  %v3420_v10 = vld [vmem:[%s3570_s28 + $0x2e0] ss:$8 sps:$4 sm:$0xff]   ;;  %v3421_v11 = vld [vmem:[%s3570_s28 + $0xf4] ss:$8 sps:$4 sm:$0xff]  }
  0x23   : > { %v3425_v13 = vld [vmem:[%s3570_s28 + $0xf0] ss:$8 sps:$4 sm:$0xff]  }
  0x24   : > { %v3426_v14 = vld [vmem:[%s3570_s28 + $0x2f0] ss:$8 sps:$4 sm:$0xff]  }
  0x25   : > { %1192 = vmatpush1.bf16.msra.mxu0 %v3327_v9  ;;  %3307 = vmatpush1.bf16.msra.mxu1 %v3327_v9  ;;  %v3419_v9 = vld [vmem:[%s3570_s28 + $0xe0] ss:$8 sps:$4 sm:$0xff]  }
  0x26   : > { %1193 = vmatprep.subr.bf16.mxu0 %v3517_v1  ;;  %3298 = vmatprep.subr.bf16.mxu1 %v3517_v1 }
  0x29   : > { %1194 = vmatpush1.bf16.msra.mxu0 %v3328_v12  ;;  %3308 = vmatpush1.bf16.msra.mxu1 %v3328_v12  ;;  %v3423_v12 = vld [vmem:[%s3570_s28 + $0x2f4] ss:$8 sps:$4 sm:$0xff]  }
  0x2a   : > { %1207 = vmatprep.subr.bf16.mxu0 %v3517_v1  ;;  %3299 = vmatprep.subr.bf16.mxu1 %v3517_v1 }
  0x2d   : > { %1208 = vmatpush2.bf16.msra.mxu0 %v1177_v15  ;;  %3309 = vmatpush2.bf16.msra.mxu1 %v1177_v15  ;;  %v3427_v15 = vld [vmem:[%s3570_s28 + $0x104] ss:$8 sps:$4 sm:$0xff]  }
  0x2e   : > { %1209 = vmatprep.subr.bf16.mxu0 %v3517_v1  ;;  %3300 = vmatprep.subr.bf16.mxu1 %v3517_v1  ;;  %v3407_v1 = vld [vmem:[%s3570_s28 + $0xc0] ss:$8 sps:$4 sm:$0xff]  }
  0x31   : > { %1210 = vmatpush2.bf16.msra.mxu0 %v3330_v16  ;;  %3310 = vmatpush2.bf16.msra.mxu1 %v3330_v16  ;;  %v3429_v16 = vld [vmem:[%s3570_s28 + $0x304] ss:$8 sps:$4 sm:$0xff]  }
  0x34   : > { %1212 = vmatmul.mubr.bf16.vlgmr.msra.gmra.mxu0 %v3331_v17  ;;  %1468 = vmatmul.mubr.bf16.vlgmr.msra.gmra.mxu1 %v3334_v18  ;;  %v3431_v17 = vld [vmem:[%s3570_s28 + $0x100] ss:$8 sps:$4 sm:$0xff]  }
  0x35   : > { %2966 = vmatprep.mubr.msk.bf16.mxu0 %vm979_vm0, %v3337_v19  ;;  %2998 = vmatprep.mubr.msk.bf16.mxu1 %vm979_vm0, %v3339_v20  ;;  %v3432_v18 = vld [vmem:[%s3570_s28 + $0x300] ss:$8 sps:$4 sm:$0xff]   ;;  %v3433_v19 = vld [vmem:[%s3570_s28 + $0x114] ss:$8 sps:$4 sm:$0xff]  }
  0x36   : > { %v3435_v20 = vld [vmem:[%s3570_s28 + $0x314] ss:$8 sps:$4 sm:$0xff]  }
  0x3c   : > { %1220 = vmatmul.mubr.bf16.gmra.mxu0 %v3341_v21  ;;  %1476 = vmatmul.mubr.bf16.gmra.mxu1 %v3342_v22  ;;  %v3437_v21 = vld [vmem:[%s3570_s28 + $0x110] ss:$8 sps:$4 sm:$0xff]  }
  0x3d   : > { %2967 = vmatprep.mubr.msk.bf16.mxu0 %vm979_vm0, %v3343_v23  ;;  %2999 = vmatprep.mubr.msk.bf16.mxu1 %vm979_vm0, %v3345_v24  ;;  %v3438_v22 = vld [vmem:[%s3570_s28 + $0x310] ss:$8 sps:$4 sm:$0xff]   ;;  %v3439_v23 = vld [vmem:[%s3570_s28 + $0x124] ss:$8 sps:$4 sm:$0xff]  }
  0x3e   : > { %v3441_v24 = vld [vmem:[%s3570_s28 + $0x324] ss:$8 sps:$4 sm:$0xff]  }
  0x44   : > { %1228 = vmatmul.mubr.bf16.gmra.mxu0 %v3347_v25  ;;  %1484 = vmatmul.mubr.bf16.gmra.mxu1 %v3348_v26  ;;  %v3443_v25 = vld [vmem:[%s3570_s28 + $0x120] ss:$8 sps:$4 sm:$0xff]  }
  0x45   : > { %2968 = vmatprep.mubr.msk.bf16.mxu0 %vm979_vm0, %v3349_v27  ;;  %3000 = vmatprep.mubr.msk.bf16.mxu1 %vm979_vm0, %v3351_v28  ;;  %v3444_v26 = vld [vmem:[%s3570_s28 + $0x320] ss:$8 sps:$4 sm:$0xff]   ;;  %v3445_v27 = vld [vmem:[%s3570_s28 + $0x134] ss:$8 sps:$4 sm:$0xff]  }
  0x46   : > { %v3447_v28 = vld [vmem:[%s3570_s28 + $0x334] ss:$8 sps:$4 sm:$0xff]  }
  0x4c   : > { %1236 = vmatmul.mubr.bf16.gmra.mxu0 %v3353_v29  ;;  %1492 = vmatmul.mubr.bf16.gmra.mxu1 %v3354_v30  ;;  %v3449_v29 = vld [vmem:[%s3570_s28 + $0x130] ss:$8 sps:$4 sm:$0xff]  }
  0x4d   : > { %2969 = vmatprep.mubr.msk.bf16.mxu0 %vm979_vm0, %v3355_v31  ;;  %3001 = vmatprep.mubr.msk.bf16.mxu1 %vm979_vm0, %v3357_v32  ;;  %v3450_v30 = vld [vmem:[%s3570_s28 + $0x330] ss:$8 sps:$4 sm:$0xff]   ;;  %v3451_v31 = vld [vmem:[%s3570_s28 + $0x144] ss:$8 sps:$4 sm:$0xff]  }
  0x4e   : > { %v3453_v32 = vld [vmem:[%s3570_s28 + $0x344] ss:$8 sps:$4 sm:$0xff]  }
  0x54   : > { %1244 = vmatmul.mubr.bf16.gmra.mxu0 %v3359_v33  ;;  %1500 = vmatmul.mubr.bf16.gmra.mxu1 %v3360_v34  ;;  %v3455_v33 = vld [vmem:[%s3570_s28 + $0x140] ss:$8 sps:$4 sm:$0xff]  }
  0x55   : > { %2970 = vmatprep.mubr.msk.bf16.mxu0 %vm979_vm0, %v3361_v35  ;;  %3002 = vmatprep.mubr.msk.bf16.mxu1 %vm979_vm0, %v3363_v36  ;;  %v3456_v34 = vld [vmem:[%s3570_s28 + $0x340] ss:$8 sps:$4 sm:$0xff]   ;;  %v3457_v35 = vld [vmem:[%s3570_s28 + $0x154] ss:$8 sps:$4 sm:$0xff]  }
  0x56   : > { %v3459_v36 = vld [vmem:[%s3570_s28 + $0x354] ss:$8 sps:$4 sm:$0xff]  }
  0x5c   : > { %1252 = vmatmul.mubr.bf16.gmra.mxu0 %v3365_v37  ;;  %1508 = vmatmul.mubr.bf16.gmra.mxu1 %v3366_v38  ;;  %v3461_v37 = vld [vmem:[%s3570_s28 + $0x150] ss:$8 sps:$4 sm:$0xff]  }
  0x5d   : > { %2971 = vmatprep.mubr.msk.bf16.mxu0 %vm979_vm0, %v3367_v39  ;;  %3003 = vmatprep.mubr.msk.bf16.mxu1 %vm979_vm0, %v3369_v40  ;;  %v3462_v38 = vld [vmem:[%s3570_s28 + $0x350] ss:$8 sps:$4 sm:$0xff]   ;;  %v3463_v39 = vld [vmem:[%s3570_s28 + $0x164] ss:$8 sps:$4 sm:$0xff]  }
  0x5e   : > { %v3465_v40 = vld [vmem:[%s3570_s28 + $0x364] ss:$8 sps:$4 sm:$0xff]  }
  0x64   : > { %1260 = vmatmul.mubr.bf16.gmra.mxu0 %v3371_v41  ;;  %1516 = vmatmul.mubr.bf16.gmra.mxu1 %v3372_v42  ;;  %v3467_v41 = vld [vmem:[%s3570_s28 + $0x160] ss:$8 sps:$4 sm:$0xff]  }
  0x65   : > { %2972 = vmatprep.mubr.msk.bf16.mxu0 %vm979_vm0, %v3373_v43  ;;  %3004 = vmatprep.mubr.msk.bf16.mxu1 %vm979_vm0, %v3375_v44  ;;  %v3468_v42 = vld [vmem:[%s3570_s28 + $0x360] ss:$8 sps:$4 sm:$0xff]   ;;  %v3469_v43 = vld [vmem:[%s3570_s28 + $0x174] ss:$8 sps:$4 sm:$0xff]  }
  0x66   : > { %v3471_v44 = vld [vmem:[%s3570_s28 + $0x374] ss:$8 sps:$4 sm:$0xff]  }
  0x6c   : > { %1268 = vmatmul.mubr.bf16.gmra.mxu0 %v3377_v45  ;;  %1524 = vmatmul.mubr.bf16.gmra.mxu1 %v3378_v46  ;;  %v3473_v45 = vld [vmem:[%s3570_s28 + $0x170] ss:$8 sps:$4 sm:$0xff]  }
  0x6d   : > { %2973 = vmatprep.mubr.msk.bf16.mxu0 %vm979_vm0, %v3379_v47  ;;  %3005 = vmatprep.mubr.msk.bf16.mxu1 %vm979_vm0, %v3381_v48  ;;  %v3474_v46 = vld [vmem:[%s3570_s28 + $0x370] ss:$8 sps:$4 sm:$0xff]   ;;  %v3475_v47 = vld [vmem:[%s3570_s28 + $0x184] ss:$8 sps:$4 sm:$0xff]  }
  0x6e   : > { %v3477_v48 = vld [vmem:[%s3570_s28 + $0x384] ss:$8 sps:$4 sm:$0xff]  }
  0x74   : > { %1276 = vmatmul.mubr.bf16.gmra.mxu0 %v3383_v49  ;;  %1532 = vmatmul.mubr.bf16.gmra.mxu1 %v3384_v50  ;;  %v247_v49 = vld [vmem:[%s3570_s28 + $0x180] sm:$0xff]  ;;  %v248_v50 = vld [vmem:[%s3570_s28 + $0x188] sm:$0xff] }
  0x75   : > { %2974 = vmatprep.mubr.msk.bf16.mxu0 %vm979_vm0, %v3385_v51  ;;  %3006 = vmatprep.mubr.msk.bf16.mxu1 %vm979_vm0, %v3387_v52  ;;  %v311_v51 = vld [vmem:[%s3570_s28 + $0x380] sm:$0xff]  ;;  %v312_v52 = vld [vmem:[%s3570_s28 + $0x388] sm:$0xff] }
  0x7c   : > { %1284 = vmatmul.mubr.bf16.gmra.mxu0 %v3389_v53  ;;  %1540 = vmatmul.mubr.bf16.gmra.mxu1 %v3390_v54  ;;  %v2875_v53 = vcombine.low %v247_v49, %v248_v50  ;;  %v2939_v54 = vcombine.low %v311_v51, %v312_v52 }
  0x7d   : > { %2975 = vmatprep.mubr.msk.bf16.mxu0 %vm979_vm0, %v3391_v55  ;;  %3007 = vmatprep.mubr.msk.bf16.mxu1 %vm979_vm0, %v3393_v56  ;;  %v3479_v55 = vld [vmem:[%s3570_s28 + $0x194] ss:$8 sps:$4 sm:$0xff]  }
  0x7e   : > { %v3481_v56 = vld [vmem:[%s3570_s28 + $0x394] ss:$8 sps:$4 sm:$0xff]  }
  0x84   : > { %1292 = vmatmul.mubr.bf16.gmra.mxu0 %v3395_v57  ;;  %1548 = vmatmul.mubr.bf16.gmra.mxu1 %v3396_v58  ;;  %v3747_v57 = vld [vmem:[%s4341_s2] ss:$0 sm:$0xff] }
  0x85   : > { %2976 = vmatprep.mubr.msk.bf16.mxu0 %vm979_vm0, %v3397_v59  ;;  %3008 = vmatprep.mubr.msk.bf16.mxu1 %vm979_vm0, %v3399_v60  ;;  %v3752_v59 = vld [vmem:[%s4342_s3] ss:$0 sm:$0xff] }
  0x8c   : > { %1300 = vmatmul.mubr.bf16.gmra.mxu0 %v3401_v61  ;;  %1556 = vmatmul.mubr.bf16.gmra.mxu1 %v3402_v62  ;;  %v249_v61 = vld [vmem:[%s3570_s28 + $0x190] sm:$0xff] }
  0x8d   : > { %2977 = vmatprep.mubr.msk.bf16.mxu0 %vm979_vm0, %v3403_v63  ;;  %3009 = vmatprep.mubr.msk.bf16.mxu1 %vm979_vm0, %v3405_v0  ;;  %v250_v0 = vld [vmem:[%s3570_s28 + $0x198] sm:$0xff] }
  0x94   : > { %1308 = vmatmul.mubr.bf16.gmra.mxu0 %v3407_v1  ;;  %1564 = vmatmul.mubr.bf16.gmra.mxu1 %v3408_v2  ;;  %v313_v1 = vld [vmem:[%s3570_s28 + $0x390] sm:$0xff]  ;;  %v314_v2 = vld [vmem:[%s3570_s28 + $0x398] sm:$0xff] }
  0x95   : > { %2978 = vmatprep.mubr.msk.bf16.mxu0 %vm979_vm0, %v3409_v3  ;;  %3010 = vmatprep.mubr.msk.bf16.mxu1 %vm979_vm0, %v3411_v4 }
  0x9c   : > { %1316 = vmatmul.mubr.bf16.gmra.mxu0 %v3413_v5  ;;  %1572 = vmatmul.mubr.bf16.gmra.mxu1 %v3414_v6 }
  0x9d   : > { %2979 = vmatprep.mubr.msk.bf16.mxu0 %vm979_vm0, %v3415_v7  ;;  %3011 = vmatprep.mubr.msk.bf16.mxu1 %vm979_vm0, %v3417_v8 }
  0xa4   : > { %1324 = vmatmul.mubr.bf16.gmra.mxu0 %v3419_v9  ;;  %1580 = vmatmul.mubr.bf16.gmra.mxu1 %v3420_v10  ;;  %v2877_v9 = vcombine.low %v249_v61, %v250_v0  ;;  %v2941_v10 = vcombine.low %v313_v1, %v314_v2  ;;  %v254_v0 = vld [vmem:[%s3570_s28 + $0x1b8] sm:$0xff]  ;;  %v317_v1 = vld [vmem:[%s3570_s28 + $0x3b0] sm:$0xff] }
  0xa5   : > { %2980 = vmatprep.mubr.msk.bf16.mxu0 %vm979_vm0, %v3421_v11  ;;  %3012 = vmatprep.mubr.msk.bf16.mxu1 %vm979_vm0, %v3423_v12  ;;  %v318_v2 = vld [vmem:[%s3570_s28 + $0x3b8] sm:$0xff] }
  0xac   : > { %1332 = vmatmul.mubr.bf16.gmra.mxu0 %v3425_v13  ;;  %1588 = vmatmul.mubr.bf16.gmra.mxu1 %v3426_v14 }
  0xad   : > { %2981 = vmatprep.mubr.msk.bf16.mxu0 %vm979_vm0, %v3427_v15  ;;  %3013 = vmatprep.mubr.msk.bf16.mxu1 %vm979_vm0, %v3429_v16  ;;  %v3483_v15 = vld [vmem:[%s3570_s28 + $0x1a4] ss:$8 sps:$4 sm:$0xff]  }
  0xae   : > { %v3485_v16 = vld [vmem:[%s3570_s28 + $0x3a4] ss:$8 sps:$4 sm:$0xff]  }
  0xb4   : > { %1340 = vmatmul.mubr.bf16.gmra.mxu0 %v3431_v17  ;;  %1596 = vmatmul.mubr.bf16.gmra.mxu1 %v3432_v18 }
  0xb5   : > { %2982 = vmatprep.mubr.msk.bf16.mxu0 %vm979_vm0, %v3433_v19  ;;  %3014 = vmatprep.mubr.msk.bf16.mxu1 %vm979_vm0, %v3435_v20 }
  0xbc   : > { %1348 = vmatmul.mubr.bf16.gmra.mxu0 %v3437_v21  ;;  %1604 = vmatmul.mubr.bf16.gmra.mxu1 %v3438_v22 }
  0xbd   : > { %2983 = vmatprep.mubr.msk.bf16.mxu0 %vm979_vm0, %v3439_v23  ;;  %3015 = vmatprep.mubr.msk.bf16.mxu1 %vm979_vm0, %v3441_v24 }
  0xc4   : > { %1356 = vmatmul.mubr.bf16.gmra.mxu0 %v3443_v25  ;;  %1612 = vmatmul.mubr.bf16.gmra.mxu1 %v3444_v26  ;;  %v251_v25 = vld [vmem:[%s3570_s28 + $0x1a0] sm:$0xff] }
  0xc5   : > { %2984 = vmatprep.mubr.msk.bf16.mxu0 %vm979_vm0, %v3445_v27  ;;  %3016 = vmatprep.mubr.msk.bf16.mxu1 %vm979_vm0, %v3447_v28 }
  0xcc   : > { %1364 = vmatmul.mubr.bf16.gmra.mxu0 %v3449_v29  ;;  %1620 = vmatmul.mubr.bf16.gmra.mxu1 %v3450_v30  ;;  %v252_v30 = vld [vmem:[%s3570_s28 + $0x1a8] sm:$0xff] }
  0xcd   : > { %2985 = vmatprep.mubr.msk.bf16.mxu0 %vm979_vm0, %v3451_v31  ;;  %3017 = vmatprep.mubr.msk.bf16.mxu1 %vm979_vm0, %v3453_v32  ;;  %v315_v31 = vld [vmem:[%s3570_s28 + $0x3a0] sm:$0xff]  ;;  %v316_v32 = vld [vmem:[%s3570_s28 + $0x3a8] sm:$0xff] }
  0xd4   : > { %1372 = vmatmul.mubr.bf16.gmra.mxu0 %v3455_v33  ;;  %1628 = vmatmul.mubr.bf16.gmra.mxu1 %v3456_v34 }
  0xd5   : > { %2986 = vmatprep.mubr.msk.bf16.mxu0 %vm979_vm0, %v3457_v35  ;;  %3018 = vmatprep.mubr.msk.bf16.mxu1 %vm979_vm0, %v3459_v36 }
  0xdc   : > { %1380 = vmatmul.mubr.bf16.gmra.mxu0 %v3461_v37  ;;  %1636 = vmatmul.mubr.bf16.gmra.mxu1 %v3462_v38 }
  0xdd   : > { %2987 = vmatprep.mubr.msk.bf16.mxu0 %vm979_vm0, %v3463_v39  ;;  %3019 = vmatprep.mubr.msk.bf16.mxu1 %vm979_vm0, %v3465_v40 }
  0xe4   : > { %1388 = vmatmul.mubr.bf16.gmra.mxu0 %v3467_v41  ;;  %1644 = vmatmul.mubr.bf16.gmra.mxu1 %v3468_v42  ;;  %v2879_v41 = vcombine.low %v251_v25, %v252_v30  ;;  %v2943_v42 = vcombine.low %v315_v31, %v316_v32  ;;  %v256_v32 = vld [vmem:[%s3570_s28 + $0x1c8] sm:$0xff] }
  0xe5   : > { %2988 = vmatprep.mubr.msk.bf16.mxu0 %vm979_vm0, %v3469_v43  ;;  %3020 = vmatprep.mubr.msk.bf16.mxu1 %vm979_vm0, %v3471_v44 }
  0xec   : > { %1396 = vmatmul.mubr.bf16.gmra.mxu0 %v3473_v45  ;;  %1652 = vmatmul.mubr.bf16.gmra.mxu1 %v3474_v46 }
  0xed   : > { %2989 = vmatprep.mubr.msk.bf16.mxu0 %vm979_vm0, %v3475_v47  ;;  %3021 = vmatprep.mubr.msk.bf16.mxu1 %vm979_vm0, %v3477_v48  ;;  %v3487_v47 = vld [vmem:[%s3570_s28 + $0x1b4] ss:$8 sps:$4 sm:$0xff]  }
  0xee   : > { %v3489_v48 = vld [vmem:[%s3570_s28 + $0x3b4] ss:$8 sps:$4 sm:$0xff]  }
  0xf4   : > { %v1213_v58 = vpop.f32.mrf.mxu0  ;;  %1404 = vmatmul.mubr.bf16.gmra.mxu0 %v2875_v53  ;;  %v1469_v60 = vpop.f32.mrf.mxu1  ;;  %1660 = vmatmul.mubr.bf16.gmra.mxu1 %v2939_v54 }
  0xf5   : > { %v1731_v62 = vmul.f32 %v3747_v57, %v1213_v58  ;;  %v1795_v63 = vmul.f32 %v3747_v57, %v1469_v60  ;;  %2990 = vmatprep.mubr.msk.bf16.mxu0 %vm979_vm0, %v3479_v55  ;;  %3022 = vmatprep.mubr.msk.bf16.mxu1 %vm979_vm0, %v3481_v56  ;;  %v253_v58 = vld [vmem:[%s3570_s28 + $0x1b0] sm:$0xff] }
  0xf6   : > { %v1215_v3 = vpop.f32.mrf.mxu0  ;;  %v1471_v4 = vpop.f32.mrf.mxu1 }
  0xf7   : > { %v1866_v5 = vadd.f32 %v3752_v59, %v1731_v62  ;;  %v1930_v6 = vadd.f32 %v3752_v59, %v1795_v63 }
  0xf8   : > { %v1216_v7 = vpop.f32.mrf.mxu0  ;;  %v1472_v8 = vpop.f32.mrf.mxu1 }
  0xf9   : > { %v1994_v11 = vmax.f32 %v1866_v5, 0.0  ;;  %v2058_v12 = vmax.f32 %v1930_v6, 0.0  ;;  %v1732_v13 = vmul.f32 %v3747_v57, %v1216_v7  ;;  %v1796_v14 = vmul.f32 %v3747_v57, %v1472_v8 }
  0xfa   : > { %v1218_v17 = vpop.f32.mrf.mxu0  ;;  %v1474_v18 = vpop.f32.mrf.mxu1 }
  0xfb   : > { %v3163_v19 = vpack.c.bf16 %v1994_v11, %v1994_v11  ;;  %v3227_v20 = vpack.c.bf16 %v2058_v12, %v2058_v12  ;;  %v1867_v21 = vadd.f32 %v3752_v59, %v1732_v13  ;;  %v1931_v22 = vadd.f32 %v3752_v59, %v1796_v14  ;;  %v3491_v17 = vld [vmem:[%s3570_s28 + $0x1c4] ss:$8 sps:$4 sm:$0xff]  }
  0xfc   : > { %v1221_v23 = vpop.f32.mrf.mxu0  ;;  %1412 = vmatmul.mubr.bf16.gmra.mxu0 %v2877_v9  ;;  %v1477_v24 = vpop.f32.mrf.mxu1  ;;  %1668 = vmatmul.mubr.bf16.gmra.mxu1 %v2941_v10  ;;  %v2881_v11 = vcombine.low %v253_v58, %v254_v0  ;;  %v2945_v12 = vcombine.low %v317_v1, %v318_v2  ;;  %v3493_v18 = vld [vmem:[%s3570_s28 + $0x3c4] ss:$8 sps:$4 sm:$0xff]   ;;  %v258_v2 = vld [vmem:[%s3570_s28 + $0x1d8] sm:$0xff] }
  0xfd   : > { %2635 = vst.msk [vmem:[%s3772_s16] sm:$0xf] %vm2634_vm3, %v3163_v19  ;;  %2699 = vst.msk [vmem:[%s3772_s16 + $0x100] sm:$0xf] %vm2634_vm3, %v3227_v20  ;;  %v1995_v26 = vmax.f32 %v1867_v21, 0.0  ;;  %v2059_v27 = vmax.f32 %v1931_v22, 0.0  ;;  %v1733_v28 = vmul.f32 %v3747_v57, %v1221_v23  ;;  %v1797_v29 = vmul.f32 %v3747_v57, %v1477_v24  ;;  %2991 = vmatprep.mubr.msk.bf16.mxu0 %vm979_vm0, %v3483_v15 }
  0xfe   : > { %3023 = vmatprep.mubr.msk.bf16.mxu1 %vm979_vm0, %v3485_v16  ;;  %v1223_v33 = vpop.f32.mrf.mxu0  ;;  %v1479_v34 = vpop.f32.mrf.mxu1 }
  0xff   : > { %v3164_v35 = vpack.c.bf16 %v1995_v26, %v1995_v26  ;;  %v3228_v36 = vpack.c.bf16 %v2059_v27, %v2059_v27  ;;  %v1868_v37 = vadd.f32 %v3752_v59, %v1733_v28  ;;  %v1932_v38 = vadd.f32 %v3752_v59, %v1797_v29  ;;  %v255_v27 = vld [vmem:[%s3570_s28 + $0x1c0] sm:$0xff]  ;;  %v320_v34 = vld [vmem:[%s3570_s28 + $0x3c8] sm:$0xff] }
 0x100   : > { %v1224_v39 = vpop.f32.mrf.mxu0  ;;  %v1480_v40 = vpop.f32.mrf.mxu1  ;;  %v319_v33 = vld [vmem:[%s3570_s28 + $0x3c0] sm:$0xff] }
 0x101   : > { %2636 = vst.msk [vmem:[%s3772_s16 + $0x4] sm:$0xf] %vm2634_vm3, %v3164_v35  ;;  %2700 = vst.msk [vmem:[%s3772_s16 + $0x104] sm:$0xf] %vm2634_vm3, %v3228_v36  ;;  %v1996_v43 = vmax.f32 %v1868_v37, 0.0  ;;  %v2060_v44 = vmax.f32 %v1932_v38, 0.0  ;;  %v1734_v45 = vmul.f32 %v3747_v57, %v1224_v39  ;;  %v1798_v46 = vmul.f32 %v3747_v57, %v1480_v40 }
 0x102   : > { %v1226_v49 = vpop.f32.mrf.mxu0  ;;  %v1482_v50 = vpop.f32.mrf.mxu1 }
 0x103   : > { %v3165_v51 = vpack.c.bf16 %v1996_v43, %v1996_v43  ;;  %v3229_v52 = vpack.c.bf16 %v2060_v44, %v2060_v44  ;;  %v1869_v53 = vadd.f32 %v3752_v59, %v1734_v45  ;;  %v1933_v54 = vadd.f32 %v3752_v59, %v1798_v46  ;;  %v3495_v49 = vld [vmem:[%s3570_s28 + $0x1d4] ss:$8 sps:$4 sm:$0xff]  }
 0x104   : > { %v1229_v55 = vpop.f32.mrf.mxu0  ;;  %1420 = vmatmul.mubr.bf16.gmra.mxu0 %v2879_v41  ;;  %v1485_v56 = vpop.f32.mrf.mxu1  ;;  %1676 = vmatmul.mubr.bf16.gmra.mxu1 %v2943_v42  ;;  %v2883_v43 = vcombine.low %v255_v27, %v256_v32  ;;  %v2947_v44 = vcombine.low %v319_v33, %v320_v34  ;;  %v3497_v50 = vld [vmem:[%s3570_s28 + $0x3d4] ss:$8 sps:$4 sm:$0xff]   ;;  %v260_v34 = vld [vmem:[%s3570_s28 + $0x1e8] sm:$0xff] }
 0x105   : > { %2637 = vst.msk [vmem:[%s3772_s16 + $0x8] sm:$0xf] %vm2634_vm3, %v3165_v51  ;;  %2701 = vst.msk [vmem:[%s3772_s16 + $0x108] sm:$0xf] %vm2634_vm3, %v3229_v52  ;;  %v1997_v60 = vmax.f32 %v1869_v53, 0.0  ;;  %v2061_v61 = vmax.f32 %v1933_v54, 0.0  ;;  %v1735_v62 = vmul.f32 %v3747_v57, %v1229_v55  ;;  %v1799_v63 = vmul.f32 %v3747_v57, %v1485_v56  ;;  %2992 = vmatprep.mubr.msk.bf16.mxu0 %vm979_vm0, %v3487_v47 }
 0x106   : > { %3024 = vmatprep.mubr.msk.bf16.mxu1 %vm979_vm0, %v3489_v48  ;;  %v1231_v3 = vpop.f32.mrf.mxu0  ;;  %v1487_v4 = vpop.f32.mrf.mxu1 }
 0x107   : > { %v3166_v5 = vpack.c.bf16 %v1997_v60, %v1997_v60  ;;  %v3230_v6 = vpack.c.bf16 %v2061_v61, %v2061_v61  ;;  %v1870_v7 = vadd.f32 %v3752_v59, %v1735_v62  ;;  %v1934_v8 = vadd.f32 %v3752_v59, %v1799_v63  ;;  %v257_v61 = vld [vmem:[%s3570_s28 + $0x1d0] sm:$0xff]  ;;  %v322_v4 = vld [vmem:[%s3570_s28 + $0x3d8] sm:$0xff] }
 0x108   : > { %v1232_v9 = vpop.f32.mrf.mxu0  ;;  %v1488_v10 = vpop.f32.mrf.mxu1  ;;  %v321_v3 = vld [vmem:[%s3570_s28 + $0x3d0] sm:$0xff] }
 0x109   : > { %2638 = vst.msk [vmem:[%s3772_s16 + $0xc] sm:$0xf] %vm2634_vm3, %v3166_v5  ;;  %2702 = vst.msk [vmem:[%s3772_s16 + $0x10c] sm:$0xf] %vm2634_vm3, %v3230_v6  ;;  %v1998_v13 = vmax.f32 %v1870_v7, 0.0  ;;  %v2062_v14 = vmax.f32 %v1934_v8, 0.0  ;;  %v1736_v15 = vmul.f32 %v3747_v57, %v1232_v9  ;;  %v1800_v16 = vmul.f32 %v3747_v57, %v1488_v10 }
 0x10a   : > { %v1234_v19 = vpop.f32.mrf.mxu0  ;;  %v1490_v20 = vpop.f32.mrf.mxu1 }
 0x10b   : > { %v3167_v21 = vpack.c.bf16 %v1998_v13, %v1998_v13  ;;  %v3231_v22 = vpack.c.bf16 %v2062_v14, %v2062_v14  ;;  %v1871_v23 = vadd.f32 %v3752_v59, %v1736_v15  ;;  %v1935_v24 = vadd.f32 %v3752_v59, %v1800_v16  ;;  %v3499_v19 = vld [vmem:[%s3570_s28 + $0x1e4] ss:$8 sps:$4 sm:$0xff]  }
 0x10c   : > { %v1237_v25 = vpop.f32.mrf.mxu0  ;;  %1428 = vmatmul.mubr.bf16.gmra.mxu0 %v2881_v11  ;;  %v1493_v26 = vpop.f32.mrf.mxu1  ;;  %1684 = vmatmul.mubr.bf16.gmra.mxu1 %v2945_v12  ;;  %v2885_v13 = vcombine.low %v257_v61, %v258_v2  ;;  %v2949_v14 = vcombine.low %v321_v3, %v322_v4  ;;  %v3501_v20 = vld [vmem:[%s3570_s28 + $0x3e4] ss:$8 sps:$4 sm:$0xff]   ;;  %v262_v4 = vld [vmem:[%s3570_s28 + $0x1f8] sm:$0xff] }
 0x10d   : > { %2639 = vst.msk [vmem:[%s3772_s16 + $0x10] sm:$0xf] %vm2634_vm3, %v3167_v21  ;;  %2703 = vst.msk [vmem:[%s3772_s16 + $0x110] sm:$0xf] %vm2634_vm3, %v3231_v22  ;;  %v1999_v28 = vmax.f32 %v1871_v23, 0.0  ;;  %v2063_v29 = vmax.f32 %v1935_v24, 0.0  ;;  %v1737_v30 = vmul.f32 %v3747_v57, %v1237_v25  ;;  %v1801_v31 = vmul.f32 %v3747_v57, %v1493_v26  ;;  %2993 = vmatprep.mubr.msk.bf16.mxu0 %vm979_vm0, %v3491_v17 }
 0x10e   : > { %3025 = vmatprep.mubr.msk.bf16.mxu1 %vm979_vm0, %v3493_v18  ;;  %v1239_v35 = vpop.f32.mrf.mxu0  ;;  %v1495_v36 = vpop.f32.mrf.mxu1 }
 0x10f   : > { %v3168_v37 = vpack.c.bf16 %v1999_v28, %v1999_v28  ;;  %v3232_v38 = vpack.c.bf16 %v2063_v29, %v2063_v29  ;;  %v1872_v39 = vadd.f32 %v3752_v59, %v1737_v30  ;;  %v1936_v40 = vadd.f32 %v3752_v59, %v1801_v31  ;;  %v259_v29 = vld [vmem:[%s3570_s28 + $0x1e0] sm:$0xff]  ;;  %v324_v36 = vld [vmem:[%s3570_s28 + $0x3e8] sm:$0xff] }
 0x110   : > { %v1240_v41 = vpop.f32.mrf.mxu0  ;;  %v1496_v42 = vpop.f32.mrf.mxu1  ;;  %v323_v35 = vld [vmem:[%s3570_s28 + $0x3e0] sm:$0xff] }
 0x111   : > { %2640 = vst.msk [vmem:[%s3772_s16 + $0x14] sm:$0xf] %vm2634_vm3, %v3168_v37  ;;  %2704 = vst.msk [vmem:[%s3772_s16 + $0x114] sm:$0xf] %vm2634_vm3, %v3232_v38  ;;  %v2000_v45 = vmax.f32 %v1872_v39, 0.0  ;;  %v2064_v46 = vmax.f32 %v1936_v40, 0.0  ;;  %v1738_v47 = vmul.f32 %v3747_v57, %v1240_v41  ;;  %v1802_v48 = vmul.f32 %v3747_v57, %v1496_v42 }
 0x112   : > { %v1242_v51 = vpop.f32.mrf.mxu0  ;;  %v1498_v52 = vpop.f32.mrf.mxu1 }
 0x113   : > { %v3169_v53 = vpack.c.bf16 %v2000_v45, %v2000_v45  ;;  %v3233_v54 = vpack.c.bf16 %v2064_v46, %v2064_v46  ;;  %v1873_v55 = vadd.f32 %v3752_v59, %v1738_v47  ;;  %v1937_v56 = vadd.f32 %v3752_v59, %v1802_v48  ;;  %v3503_v51 = vld [vmem:[%s3570_s28 + $0x1f4] ss:$8 sps:$4 sm:$0xff]  }
 0x114   : > { %v1245_v58 = vpop.f32.mrf.mxu0  ;;  %1436 = vmatmul.mubr.bf16.gmra.mxu0 %v2883_v43  ;;  %v1501_v60 = vpop.f32.mrf.mxu1  ;;  %1692 = vmatmul.mubr.bf16.gmra.mxu1 %v2947_v44  ;;  %v2887_v45 = vcombine.low %v259_v29, %v260_v34  ;;  %v2951_v46 = vcombine.low %v323_v35, %v324_v36  ;;  %v3505_v52 = vld [vmem:[%s3570_s28 + $0x3f4] ss:$8 sps:$4 sm:$0xff]  }
 0x115   : > { %2641 = vst.msk [vmem:[%s3772_s16 + $0x18] sm:$0xf] %vm2634_vm3, %v3169_v53  ;;  %2705 = vst.msk [vmem:[%s3772_s16 + $0x118] sm:$0xf] %vm2634_vm3, %v3233_v54  ;;  %v2001_v62 = vmax.f32 %v1873_v55, 0.0  ;;  %v2065_v63 = vmax.f32 %v1937_v56, 0.0  ;;  %v1739_v0 = vmul.f32 %v3747_v57, %v1245_v58  ;;  %v1803_v1 = vmul.f32 %v3747_v57, %v1501_v60  ;;  %2994 = vmatprep.mubr.msk.bf16.mxu0 %vm979_vm0, %v3495_v49 }
 0x116   : > { %3026 = vmatprep.mubr.msk.bf16.mxu1 %vm979_vm0, %v3497_v50  ;;  %v1247_v5 = vpop.f32.mrf.mxu0  ;;  %v1503_v6 = vpop.f32.mrf.mxu1 }
 0x117   : > { %v3170_v7 = vpack.c.bf16 %v2001_v62, %v2001_v62  ;;  %v3234_v8 = vpack.c.bf16 %v2065_v63, %v2065_v63  ;;  %v1874_v9 = vadd.f32 %v3752_v59, %v1739_v0  ;;  %v1938_v10 = vadd.f32 %v3752_v59, %v1803_v1  ;;  %v261_v63 = vld [vmem:[%s3570_s28 + $0x1f0] sm:$0xff]  ;;  %v326_v6 = vld [vmem:[%s3570_s28 + $0x3f8] sm:$0xff] }
 0x118   : > { %v1248_v11 = vpop.f32.mrf.mxu0  ;;  %v1504_v12 = vpop.f32.mrf.mxu1  ;;  %v325_v5 = vld [vmem:[%s3570_s28 + $0x3f0] sm:$0xff] }
 0x119   : > { %2642 = vst.msk [vmem:[%s3772_s16 + $0x1c] sm:$0xf] %vm2634_vm3, %v3170_v7  ;;  %2706 = vst.msk [vmem:[%s3772_s16 + $0x11c] sm:$0xf] %vm2634_vm3, %v3234_v8  ;;  %v2002_v15 = vmax.f32 %v1874_v9, 0.0  ;;  %v2066_v16 = vmax.f32 %v1938_v10, 0.0  ;;  %v1740_v17 = vmul.f32 %v3747_v57, %v1248_v11  ;;  %v1804_v18 = vmul.f32 %v3747_v57, %v1504_v12 }
 0x11a   : > { %v1250_v21 = vpop.f32.mrf.mxu0  ;;  %v1506_v22 = vpop.f32.mrf.mxu1 }
 0x11b   : > { %v3171_v23 = vpack.c.bf16 %v2002_v15, %v2002_v15  ;;  %v3235_v24 = vpack.c.bf16 %v2066_v16, %v2066_v16  ;;  %v1875_v25 = vadd.f32 %v3752_v59, %v1740_v17  ;;  %v1939_v26 = vadd.f32 %v3752_v59, %v1804_v18 }
 0x11c   : > { %v1253_v27 = vpop.f32.mrf.mxu0  ;;  %1444 = vmatmul.mubr.bf16.gmra.mxu0 %v2885_v13  ;;  %v1509_v28 = vpop.f32.mrf.mxu1  ;;  %1700 = vmatmul.mubr.bf16.gmra.mxu1 %v2949_v14  ;;  %v2889_v15 = vcombine.low %v261_v63, %v262_v4  ;;  %v2953_v16 = vcombine.low %v325_v5, %v326_v6 }
 0x11d   : > { %2643 = vst.msk [vmem:[%s3772_s16 + $0x20] sm:$0xf] %vm2634_vm3, %v3171_v23  ;;  %2707 = vst.msk [vmem:[%s3772_s16 + $0x120] sm:$0xf] %vm2634_vm3, %v3235_v24  ;;  %v2003_v30 = vmax.f32 %v1875_v25, 0.0  ;;  %v2067_v31 = vmax.f32 %v1939_v26, 0.0  ;;  %v1741_v32 = vmul.f32 %v3747_v57, %v1253_v27  ;;  %v1805_v33 = vmul.f32 %v3747_v57, %v1509_v28  ;;  %2995 = vmatprep.mubr.msk.bf16.mxu0 %vm979_vm0, %v3499_v19 }
 0x11e   : > { %3027 = vmatprep.mubr.msk.bf16.mxu1 %vm979_vm0, %v3501_v20  ;;  %v1255_v37 = vpop.f32.mrf.mxu0  ;;  %v1511_v38 = vpop.f32.mrf.mxu1 }
 0x11f   : > { %v3172_v39 = vpack.c.bf16 %v2003_v30, %v2003_v30  ;;  %v3236_v40 = vpack.c.bf16 %v2067_v31, %v2067_v31  ;;  %v1876_v41 = vadd.f32 %v3752_v59, %v1741_v32  ;;  %v1940_v42 = vadd.f32 %v3752_v59, %v1805_v33 }
 0x120   : > { %v1256_v43 = vpop.f32.mrf.mxu0  ;;  %v1512_v44 = vpop.f32.mrf.mxu1 }
 0x121   : > { %2644 = vst.msk [vmem:[%s3772_s16 + $0x24] sm:$0xf] %vm2634_vm3, %v3172_v39  ;;  %2708 = vst.msk [vmem:[%s3772_s16 + $0x124] sm:$0xf] %vm2634_vm3, %v3236_v40  ;;  %v2004_v47 = vmax.f32 %v1876_v41, 0.0  ;;  %v2068_v48 = vmax.f32 %v1940_v42, 0.0  ;;  %v1742_v49 = vmul.f32 %v3747_v57, %v1256_v43  ;;  %v1806_v50 = vmul.f32 %v3747_v57, %v1512_v44 }
 0x122   : > { %v1258_v53 = vpop.f32.mrf.mxu0  ;;  %v1514_v54 = vpop.f32.mrf.mxu1 }
 0x123   : > { %v3173_v55 = vpack.c.bf16 %v2004_v47, %v2004_v47  ;;  %v3237_v56 = vpack.c.bf16 %v2068_v48, %v2068_v48  ;;  %v1877_v58 = vadd.f32 %v3752_v59, %v1742_v49  ;;  %v1941_v60 = vadd.f32 %v3752_v59, %v1806_v50 }
 0x124   : > { %v1261_v61 = vpop.f32.mrf.mxu0  ;;  %1452 = vmatmul.mubr.bf16.gmra.mxu0 %v2887_v45  ;;  %v1517_v62 = vpop.f32.mrf.mxu1  ;;  %1708 = vmatmul.mubr.bf16.gmra.mxu1 %v2951_v46 }
 0x125   : > { %2645 = vst.msk [vmem:[%s3772_s16 + $0x28] sm:$0xf] %vm2634_vm3, %v3173_v55  ;;  %2709 = vst.msk [vmem:[%s3772_s16 + $0x128] sm:$0xf] %vm2634_vm3, %v3237_v56  ;;  %v2005_v0 = vmax.f32 %v1877_v58, 0.0  ;;  %v2069_v1 = vmax.f32 %v1941_v60, 0.0  ;;  %v1743_v2 = vmul.f32 %v3747_v57, %v1261_v61  ;;  %v1807_v3 = vmul.f32 %v3747_v57, %v1517_v62  ;;  %2996 = vmatprep.mubr.msk.bf16.mxu0 %vm979_vm0, %v3503_v51 }
 0x126   : > { %3028 = vmatprep.mubr.msk.bf16.mxu1 %vm979_vm0, %v3505_v52  ;;  %v1263_v7 = vpop.f32.mrf.mxu0  ;;  %v1519_v8 = vpop.f32.mrf.mxu1 }
 0x127   : > { %v3174_v9 = vpack.c.bf16 %v2005_v0, %v2005_v0  ;;  %v3238_v10 = vpack.c.bf16 %v2069_v1, %v2069_v1  ;;  %v1878_v11 = vadd.f32 %v3752_v59, %v1743_v2  ;;  %v1942_v12 = vadd.f32 %v3752_v59, %v1807_v3 }
 0x128   : > { %v1264_v13 = vpop.f32.mrf.mxu0  ;;  %v1520_v14 = vpop.f32.mrf.mxu1 }
 0x129   : > { %2646 = vst.msk [vmem:[%s3772_s16 + $0x2c] sm:$0xf] %vm2634_vm3, %v3174_v9  ;;  %2710 = vst.msk [vmem:[%s3772_s16 + $0x12c] sm:$0xf] %vm2634_vm3, %v3238_v10  ;;  %v2006_v17 = vmax.f32 %v1878_v11, 0.0  ;;  %v2070_v18 = vmax.f32 %v1942_v12, 0.0  ;;  %v1744_v19 = vmul.f32 %v3747_v57, %v1264_v13  ;;  %v1808_v20 = vmul.f32 %v3747_v57, %v1520_v14 }
 0x12a   : > { %v1266_v21 = vpop.f32.mrf.mxu0  ;;  %v1522_v22 = vpop.f32.mrf.mxu1 }
 0x12b   : > { %v3175_v23 = vpack.c.bf16 %v2006_v17, %v2006_v17  ;;  %v3239_v24 = vpack.c.bf16 %v2070_v18, %v2070_v18  ;;  %v1879_v25 = vadd.f32 %v3752_v59, %v1744_v19  ;;  %v1943_v26 = vadd.f32 %v3752_v59, %v1808_v20 }
 0x12c   : > { %v1269_v27 = vpop.f32.mrf.mxu0  ;;  %1460 = vmatmul.mubr.bf16.gmra.mxu0 %v2889_v15  ;;  %v1525_v28 = vpop.f32.mrf.mxu1  ;;  %1716 = vmatmul.mubr.bf16.gmra.mxu1 %v2953_v16 }
 0x12d   : > { %2647 = vst.msk [vmem:[%s3772_s16 + $0x30] sm:$0xf] %vm2634_vm3, %v3175_v23  ;;  %2711 = vst.msk [vmem:[%s3772_s16 + $0x130] sm:$0xf] %vm2634_vm3, %v3239_v24  ;;  %v2007_v29 = vmax.f32 %v1879_v25, 0.0  ;;  %v2071_v30 = vmax.f32 %v1943_v26, 0.0  ;;  %v1745_v31 = vmul.f32 %v3747_v57, %v1269_v27  ;;  %v1809_v32 = vmul.f32 %v3747_v57, %v1525_v28 }
 0x12e   : > { %v1271_v33 = vpop.f32.mrf.mxu0  ;;  %v1527_v34 = vpop.f32.mrf.mxu1 }
 0x12f   : > { %v3176_v35 = vpack.c.bf16 %v2007_v29, %v2007_v29  ;;  %v3240_v36 = vpack.c.bf16 %v2071_v30, %v2071_v30  ;;  %v1880_v37 = vadd.f32 %v3752_v59, %v1745_v31  ;;  %v1944_v38 = vadd.f32 %v3752_v59, %v1809_v32 }
 0x130   : > { %v1272_v39 = vpop.f32.mrf.mxu0  ;;  %v1528_v40 = vpop.f32.mrf.mxu1 }
 0x131   : > { %2648 = vst.msk [vmem:[%s3772_s16 + $0x34] sm:$0xf] %vm2634_vm3, %v3176_v35  ;;  %2712 = vst.msk [vmem:[%s3772_s16 + $0x134] sm:$0xf] %vm2634_vm3, %v3240_v36  ;;  %v2008_v41 = vmax.f32 %v1880_v37, 0.0  ;;  %v2072_v42 = vmax.f32 %v1944_v38, 0.0  ;;  %v1746_v43 = vmul.f32 %v3747_v57, %v1272_v39  ;;  %v1810_v44 = vmul.f32 %v3747_v57, %v1528_v40 }
 0x132   : > { %v1274_v45 = vpop.f32.mrf.mxu0  ;;  %v1530_v46 = vpop.f32.mrf.mxu1 }
 0x133   : > { %v3177_v47 = vpack.c.bf16 %v2008_v41, %v2008_v41  ;;  %v3241_v48 = vpack.c.bf16 %v2072_v42, %v2072_v42  ;;  %v1881_v49 = vadd.f32 %v3752_v59, %v1746_v43  ;;  %v1945_v50 = vadd.f32 %v3752_v59, %v1810_v44 }
 0x134   : > { %v1277_v51 = vpop.f32.mrf.mxu0  ;;  %v1533_v52 = vpop.f32.mrf.mxu1 }
 0x135   : > { %2649 = vst.msk [vmem:[%s3772_s16 + $0x38] sm:$0xf] %vm2634_vm3, %v3177_v47  ;;  %2713 = vst.msk [vmem:[%s3772_s16 + $0x138] sm:$0xf] %vm2634_vm3, %v3241_v48  ;;  %v2009_v53 = vmax.f32 %v1881_v49, 0.0  ;;  %v2073_v54 = vmax.f32 %v1945_v50, 0.0  ;;  %v1747_v55 = vmul.f32 %v3747_v57, %v1277_v51  ;;  %v1811_v56 = vmul.f32 %v3747_v57, %v1533_v52 }
 0x136   : > { %v1279_v58 = vpop.f32.mrf.mxu0  ;;  %v1535_v60 = vpop.f32.mrf.mxu1 }
 0x137   : > { %v3178_v61 = vpack.c.bf16 %v2009_v53, %v2009_v53  ;;  %v3242_v62 = vpack.c.bf16 %v2073_v54, %v2073_v54  ;;  %v1882_v63 = vadd.f32 %v3752_v59, %v1747_v55  ;;  %v1946_v0 = vadd.f32 %v3752_v59, %v1811_v56 }
 0x138   : > { %v1280_v1 = vpop.f32.mrf.mxu0  ;;  %v1536_v2 = vpop.f32.mrf.mxu1 }
 0x139   : > { %2650 = vst.msk [vmem:[%s3772_s16 + $0x3c] sm:$0xf] %vm2634_vm3, %v3178_v61  ;;  %2714 = vst.msk [vmem:[%s3772_s16 + $0x13c] sm:$0xf] %vm2634_vm3, %v3242_v62  ;;  %v2010_v3 = vmax.f32 %v1882_v63, 0.0  ;;  %v2074_v4 = vmax.f32 %v1946_v0, 0.0  ;;  %v1748_v5 = vmul.f32 %v3747_v57, %v1280_v1  ;;  %v1812_v6 = vmul.f32 %v3747_v57, %v1536_v2 }
 0x13a   : > { %v1282_v7 = vpop.f32.mrf.mxu0  ;;  %v1538_v8 = vpop.f32.mrf.mxu1 }
 0x13b   : > { %v3179_v9 = vpack.c.bf16 %v2010_v3, %v2010_v3  ;;  %v3243_v10 = vpack.c.bf16 %v2074_v4, %v2074_v4  ;;  %v1883_v11 = vadd.f32 %v3752_v59, %v1748_v5  ;;  %v1947_v12 = vadd.f32 %v3752_v59, %v1812_v6 }
 0x13c   : > { %v1285_v13 = vpop.f32.mrf.mxu0  ;;  %v1541_v14 = vpop.f32.mrf.mxu1 }
 0x13d   : > { %2651 = vst.msk [vmem:[%s3772_s16 + $0x40] sm:$0xf] %vm2634_vm3, %v3179_v9  ;;  %2715 = vst.msk [vmem:[%s3772_s16 + $0x140] sm:$0xf] %vm2634_vm3, %v3243_v10  ;;  %v2011_v15 = vmax.f32 %v1883_v11, 0.0  ;;  %v2075_v16 = vmax.f32 %v1947_v12, 0.0  ;;  %v1749_v17 = vmul.f32 %v3747_v57, %v1285_v13  ;;  %v1813_v18 = vmul.f32 %v3747_v57, %v1541_v14 }
 0x13e   : > { %v1287_v19 = vpop.f32.mrf.mxu0  ;;  %v1543_v20 = vpop.f32.mrf.mxu1 }
 0x13f   : > { %v3180_v21 = vpack.c.bf16 %v2011_v15, %v2011_v15  ;;  %v3244_v22 = vpack.c.bf16 %v2075_v16, %v2075_v16  ;;  %v1884_v23 = vadd.f32 %v3752_v59, %v1749_v17  ;;  %v1948_v24 = vadd.f32 %v3752_v59, %v1813_v18 }
 0x140   : > { %v1288_v25 = vpop.f32.mrf.mxu0  ;;  %v1544_v26 = vpop.f32.mrf.mxu1 }
 0x141   : > { %2652 = vst.msk [vmem:[%s3772_s16 + $0x44] sm:$0xf] %vm2634_vm3, %v3180_v21  ;;  %2716 = vst.msk [vmem:[%s3772_s16 + $0x144] sm:$0xf] %vm2634_vm3, %v3244_v22  ;;  %v2012_v27 = vmax.f32 %v1884_v23, 0.0  ;;  %v2076_v28 = vmax.f32 %v1948_v24, 0.0  ;;  %v1750_v29 = vmul.f32 %v3747_v57, %v1288_v25  ;;  %v1814_v30 = vmul.f32 %v3747_v57, %v1544_v26 }
 0x142   : > { %v1290_v31 = vpop.f32.mrf.mxu0  ;;  %v1546_v32 = vpop.f32.mrf.mxu1 }
 0x143   : > { %v3181_v33 = vpack.c.bf16 %v2012_v27, %v2012_v27  ;;  %v3245_v34 = vpack.c.bf16 %v2076_v28, %v2076_v28  ;;  %v1885_v35 = vadd.f32 %v3752_v59, %v1750_v29  ;;  %v1949_v36 = vadd.f32 %v3752_v59, %v1814_v30 }
 0x144   : > { %v1293_v37 = vpop.f32.mrf.mxu0  ;;  %v1549_v38 = vpop.f32.mrf.mxu1 }
 0x145   : > { %2653 = vst.msk [vmem:[%s3772_s16 + $0x48] sm:$0xf] %vm2634_vm3, %v3181_v33  ;;  %2717 = vst.msk [vmem:[%s3772_s16 + $0x148] sm:$0xf] %vm2634_vm3, %v3245_v34  ;;  %v2013_v39 = vmax.f32 %v1885_v35, 0.0  ;;  %v2077_v40 = vmax.f32 %v1949_v36, 0.0  ;;  %v1751_v41 = vmul.f32 %v3747_v57, %v1293_v37  ;;  %v1815_v42 = vmul.f32 %v3747_v57, %v1549_v38 }
 0x146   : > { %v1295_v43 = vpop.f32.mrf.mxu0  ;;  %v1551_v44 = vpop.f32.mrf.mxu1 }
 0x147   : > { %v3182_v45 = vpack.c.bf16 %v2013_v39, %v2013_v39  ;;  %v3246_v46 = vpack.c.bf16 %v2077_v40, %v2077_v40  ;;  %v1886_v47 = vadd.f32 %v3752_v59, %v1751_v41  ;;  %v1950_v48 = vadd.f32 %v3752_v59, %v1815_v42 }
 0x148   : > { %v1296_v49 = vpop.f32.mrf.mxu0  ;;  %v1552_v50 = vpop.f32.mrf.mxu1 }
 0x149   : > { %2654 = vst.msk [vmem:[%s3772_s16 + $0x4c] sm:$0xf] %vm2634_vm3, %v3182_v45  ;;  %2718 = vst.msk [vmem:[%s3772_s16 + $0x14c] sm:$0xf] %vm2634_vm3, %v3246_v46  ;;  %v2014_v51 = vmax.f32 %v1886_v47, 0.0  ;;  %v2078_v52 = vmax.f32 %v1950_v48, 0.0  ;;  %v1752_v53 = vmul.f32 %v3747_v57, %v1296_v49  ;;  %v1816_v54 = vmul.f32 %v3747_v57, %v1552_v50 }
 0x14a   : > { %v1298_v55 = vpop.f32.mrf.mxu0  ;;  %v1554_v56 = vpop.f32.mrf.mxu1 }
 0x14b   : > { %v3183_v58 = vpack.c.bf16 %v2014_v51, %v2014_v51  ;;  %v3247_v60 = vpack.c.bf16 %v2078_v52, %v2078_v52  ;;  %v1887_v61 = vadd.f32 %v3752_v59, %v1752_v53  ;;  %v1951_v62 = vadd.f32 %v3752_v59, %v1816_v54 }
 0x14c   : > { %v1301_v63 = vpop.f32.mrf.mxu0  ;;  %v1557_v0 = vpop.f32.mrf.mxu1 }
 0x14d   : > { %2655 = vst.msk [vmem:[%s3772_s16 + $0x50] sm:$0xf] %vm2634_vm3, %v3183_v58  ;;  %2719 = vst.msk [vmem:[%s3772_s16 + $0x150] sm:$0xf] %vm2634_vm3, %v3247_v60  ;;  %v2015_v1 = vmax.f32 %v1887_v61, 0.0  ;;  %v2079_v2 = vmax.f32 %v1951_v62, 0.0  ;;  %v1753_v3 = vmul.f32 %v3747_v57, %v1301_v63  ;;  %v1817_v4 = vmul.f32 %v3747_v57, %v1557_v0 }
 0x14e   : > { %v1303_v5 = vpop.f32.mrf.mxu0  ;;  %v1559_v6 = vpop.f32.mrf.mxu1 }
 0x14f   : > { %v3184_v7 = vpack.c.bf16 %v2015_v1, %v2015_v1  ;;  %v3248_v8 = vpack.c.bf16 %v2079_v2, %v2079_v2  ;;  %v1888_v9 = vadd.f32 %v3752_v59, %v1753_v3  ;;  %v1952_v10 = vadd.f32 %v3752_v59, %v1817_v4 }
 0x150   : > { %v1304_v11 = vpop.f32.mrf.mxu0  ;;  %v1560_v12 = vpop.f32.mrf.mxu1 }
 0x151   : > { %2656 = vst.msk [vmem:[%s3772_s16 + $0x54] sm:$0xf] %vm2634_vm3, %v3184_v7  ;;  %2720 = vst.msk [vmem:[%s3772_s16 + $0x154] sm:$0xf] %vm2634_vm3, %v3248_v8  ;;  %v2016_v13 = vmax.f32 %v1888_v9, 0.0  ;;  %v2080_v14 = vmax.f32 %v1952_v10, 0.0  ;;  %v1754_v15 = vmul.f32 %v3747_v57, %v1304_v11  ;;  %v1818_v16 = vmul.f32 %v3747_v57, %v1560_v12 }
 0x152   : > { %v1306_v17 = vpop.f32.mrf.mxu0  ;;  %v1562_v18 = vpop.f32.mrf.mxu1 }
 0x153   : > { %v3185_v19 = vpack.c.bf16 %v2016_v13, %v2016_v13  ;;  %v3249_v20 = vpack.c.bf16 %v2080_v14, %v2080_v14  ;;  %v1889_v21 = vadd.f32 %v3752_v59, %v1754_v15  ;;  %v1953_v22 = vadd.f32 %v3752_v59, %v1818_v16 }
 0x154   : > { %v1309_v23 = vpop.f32.mrf.mxu0  ;;  %v1565_v24 = vpop.f32.mrf.mxu1 }
 0x155   : > { %2657 = vst.msk [vmem:[%s3772_s16 + $0x58] sm:$0xf] %vm2634_vm3, %v3185_v19  ;;  %2721 = vst.msk [vmem:[%s3772_s16 + $0x158] sm:$0xf] %vm2634_vm3, %v3249_v20  ;;  %v2017_v25 = vmax.f32 %v1889_v21, 0.0  ;;  %v2081_v26 = vmax.f32 %v1953_v22, 0.0  ;;  %v1755_v27 = vmul.f32 %v3747_v57, %v1309_v23  ;;  %v1819_v28 = vmul.f32 %v3747_v57, %v1565_v24 }
 0x156   : > { %v1311_v29 = vpop.f32.mrf.mxu0  ;;  %v1567_v30 = vpop.f32.mrf.mxu1 }
 0x157   : > { %v3186_v31 = vpack.c.bf16 %v2017_v25, %v2017_v25  ;;  %v3250_v32 = vpack.c.bf16 %v2081_v26, %v2081_v26  ;;  %v1890_v33 = vadd.f32 %v3752_v59, %v1755_v27  ;;  %v1954_v34 = vadd.f32 %v3752_v59, %v1819_v28 }
 0x158   : > { %v1312_v35 = vpop.f32.mrf.mxu0  ;;  %v1568_v36 = vpop.f32.mrf.mxu1 }
 0x159   : > { %2658 = vst.msk [vmem:[%s3772_s16 + $0x5c] sm:$0xf] %vm2634_vm3, %v3186_v31  ;;  %2722 = vst.msk [vmem:[%s3772_s16 + $0x15c] sm:$0xf] %vm2634_vm3, %v3250_v32  ;;  %v2018_v37 = vmax.f32 %v1890_v33, 0.0  ;;  %v2082_v38 = vmax.f32 %v1954_v34, 0.0  ;;  %v1756_v39 = vmul.f32 %v3747_v57, %v1312_v35  ;;  %v1820_v40 = vmul.f32 %v3747_v57, %v1568_v36 }
 0x15a   : > { %v1314_v41 = vpop.f32.mrf.mxu0  ;;  %v1570_v42 = vpop.f32.mrf.mxu1 }
 0x15b   : > { %v3187_v43 = vpack.c.bf16 %v2018_v37, %v2018_v37  ;;  %v3251_v44 = vpack.c.bf16 %v2082_v38, %v2082_v38  ;;  %v1891_v45 = vadd.f32 %v3752_v59, %v1756_v39  ;;  %v1955_v46 = vadd.f32 %v3752_v59, %v1820_v40 }
 0x15c   : > { %v1317_v47 = vpop.f32.mrf.mxu0  ;;  %v1573_v48 = vpop.f32.mrf.mxu1 }
 0x15d   : > { %2659 = vst.msk [vmem:[%s3772_s16 + $0x60] sm:$0xf] %vm2634_vm3, %v3187_v43  ;;  %2723 = vst.msk [vmem:[%s3772_s16 + $0x160] sm:$0xf] %vm2634_vm3, %v3251_v44  ;;  %v2019_v49 = vmax.f32 %v1891_v45, 0.0  ;;  %v2083_v50 = vmax.f32 %v1955_v46, 0.0  ;;  %v1757_v51 = vmul.f32 %v3747_v57, %v1317_v47  ;;  %v1821_v52 = vmul.f32 %v3747_v57, %v1573_v48 }
 0x15e   : > { %v1319_v53 = vpop.f32.mrf.mxu0  ;;  %v1575_v54 = vpop.f32.mrf.mxu1  ;;  %v4056_v44 = vld [vmem:[%s4342_s3] ss:$0 sm:$0xff] }
 0x15f   : > { %v3188_v55 = vpack.c.bf16 %v2019_v49, %v2019_v49  ;;  %v3252_v56 = vpack.c.bf16 %v2083_v50, %v2083_v50  ;;  %v1892_v58 = vadd.f32 %v3752_v59, %v1757_v51  ;;  %v1956_v60 = vadd.f32 %v3752_v59, %v1821_v52 }
 0x160   : > { %v1320_v61 = vpop.f32.mrf.mxu0  ;;  %v1576_v62 = vpop.f32.mrf.mxu1 }
 0x161   : > { %2660 = vst.msk [vmem:[%s3772_s16 + $0x64] sm:$0xf] %vm2634_vm3, %v3188_v55  ;;  %2724 = vst.msk [vmem:[%s3772_s16 + $0x164] sm:$0xf] %vm2634_vm3, %v3252_v56  ;;  %v2020_v63 = vmax.f32 %v1892_v58, 0.0  ;;  %v2084_v0 = vmax.f32 %v1956_v60, 0.0  ;;  %v1758_v1 = vmul.f32 %v3747_v57, %v1320_v61  ;;  %v1822_v2 = vmul.f32 %v3747_v57, %v1576_v62 }
 0x162   : > { %v1322_v3 = vpop.f32.mrf.mxu0  ;;  %v1578_v4 = vpop.f32.mrf.mxu1 }
 0x163   : > { %v3189_v5 = vpack.c.bf16 %v2020_v63, %v2020_v63  ;;  %v3253_v6 = vpack.c.bf16 %v2084_v0, %v2084_v0  ;;  %v1893_v7 = vadd.f32 %v3752_v59, %v1758_v1  ;;  %v1957_v8 = vadd.f32 %v3752_v59, %v1822_v2 }
 0x164   : > { %v1325_v9 = vpop.f32.mrf.mxu0  ;;  %v1581_v10 = vpop.f32.mrf.mxu1 }
 0x165   : > { %2661 = vst.msk [vmem:[%s3772_s16 + $0x68] sm:$0xf] %vm2634_vm3, %v3189_v5  ;;  %2725 = vst.msk [vmem:[%s3772_s16 + $0x168] sm:$0xf] %vm2634_vm3, %v3253_v6  ;;  %v2021_v11 = vmax.f32 %v1893_v7, 0.0  ;;  %v2085_v12 = vmax.f32 %v1957_v8, 0.0  ;;  %v1759_v13 = vmul.f32 %v3747_v57, %v1325_v9  ;;  %v1823_v14 = vmul.f32 %v3747_v57, %v1581_v10 }
 0x166   : > { %v1327_v15 = vpop.f32.mrf.mxu0  ;;  %v1583_v16 = vpop.f32.mrf.mxu1 }
 0x167   : > { %v3190_v17 = vpack.c.bf16 %v2021_v11, %v2021_v11  ;;  %v3254_v18 = vpack.c.bf16 %v2085_v12, %v2085_v12  ;;  %v1894_v19 = vadd.f32 %v3752_v59, %v1759_v13  ;;  %v1958_v20 = vadd.f32 %v3752_v59, %v1823_v14 }
 0x168   : > { %v1328_v21 = vpop.f32.mrf.mxu0  ;;  %v1584_v22 = vpop.f32.mrf.mxu1 }
 0x169   : > { %2662 = vst.msk [vmem:[%s3772_s16 + $0x6c] sm:$0xf] %vm2634_vm3, %v3190_v17  ;;  %2726 = vst.msk [vmem:[%s3772_s16 + $0x16c] sm:$0xf] %vm2634_vm3, %v3254_v18  ;;  %v2022_v23 = vmax.f32 %v1894_v19, 0.0  ;;  %v2086_v24 = vmax.f32 %v1958_v20, 0.0  ;;  %v1760_v25 = vmul.f32 %v3747_v57, %v1328_v21  ;;  %v1824_v26 = vmul.f32 %v3747_v57, %v1584_v22 }
 0x16a   : > { %v1330_v27 = vpop.f32.mrf.mxu0  ;;  %v1586_v28 = vpop.f32.mrf.mxu1 }
 0x16b   : > { %v3191_v29 = vpack.c.bf16 %v2022_v23, %v2022_v23  ;;  %v3255_v30 = vpack.c.bf16 %v2086_v24, %v2086_v24  ;;  %v1895_v31 = vadd.f32 %v3752_v59, %v1760_v25  ;;  %v1959_v32 = vadd.f32 %v3752_v59, %v1824_v26 }
 0x16c   : > { %v1333_v33 = vpop.f32.mrf.mxu0  ;;  %v1589_v34 = vpop.f32.mrf.mxu1 }
 0x16d   : > { %2663 = vst.msk [vmem:[%s3772_s16 + $0x70] sm:$0xf] %vm2634_vm3, %v3191_v29  ;;  %2727 = vst.msk [vmem:[%s3772_s16 + $0x170] sm:$0xf] %vm2634_vm3, %v3255_v30  ;;  %v2023_v35 = vmax.f32 %v1895_v31, 0.0  ;;  %v2087_v36 = vmax.f32 %v1959_v32, 0.0  ;;  %v1761_v37 = vmul.f32 %v3747_v57, %v1333_v33  ;;  %v1825_v38 = vmul.f32 %v3747_v57, %v1589_v34 }
 0x16e   : > { %v1335_v39 = vpop.f32.mrf.mxu0  ;;  %v1591_v40 = vpop.f32.mrf.mxu1 }
 0x16f   : > { %v3192_v41 = vpack.c.bf16 %v2023_v35, %v2023_v35  ;;  %v3256_v42 = vpack.c.bf16 %v2087_v36, %v2087_v36  ;;  %v1896_v43 = vadd.f32 %v3752_v59, %v1761_v37  ;;  %v1960_v45 = vadd.f32 %v4056_v44, %v1825_v38  ;;  %v4066_v59 = vld [vmem:[%s4341_s2] ss:$0 sm:$0xff] }
 0x170   : > { %v1336_v46 = vpop.f32.mrf.mxu0  ;;  %v1592_v47 = vpop.f32.mrf.mxu1 }
 0x171   : > { %2664 = vst.msk [vmem:[%s3772_s16 + $0x74] sm:$0xf] %vm2634_vm3, %v3192_v41  ;;  %2728 = vst.msk [vmem:[%s3772_s16 + $0x174] sm:$0xf] %vm2634_vm3, %v3256_v42  ;;  %v2024_v57 = vmax.f32 %v1896_v43, 0.0  ;;  %v2088_v48 = vmax.f32 %v1960_v45, 0.0  ;;  %v1762_v49 = vmul.f32 %v4066_v59, %v1336_v46  ;;  %v1826_v50 = vmul.f32 %v4066_v59, %v1592_v47 }
 0x172   : > { %v1338_v51 = vpop.f32.mrf.mxu0  ;;  %v1594_v52 = vpop.f32.mrf.mxu1 }
 0x173   : > { %v3193_v53 = vpack.c.bf16 %v2024_v57, %v2024_v57  ;;  %v3257_v54 = vpack.c.bf16 %v2088_v48, %v2088_v48  ;;  %v1897_v55 = vadd.f32 %v4056_v44, %v1762_v49  ;;  %v1961_v56 = vadd.f32 %v4056_v44, %v1826_v50 }
 0x174   : > { %v1341_v58 = vpop.f32.mrf.mxu0  ;;  %v1597_v60 = vpop.f32.mrf.mxu1 }
 0x175   : > { %2665 = vst.msk [vmem:[%s3772_s16 + $0x78] sm:$0xf] %vm2634_vm3, %v3193_v53  ;;  %2729 = vst.msk [vmem:[%s3772_s16 + $0x178] sm:$0xf] %vm2634_vm3, %v3257_v54  ;;  %v2025_v61 = vmax.f32 %v1897_v55, 0.0  ;;  %v2089_v62 = vmax.f32 %v1961_v56, 0.0  ;;  %v1763_v63 = vmul.f32 %v4066_v59, %v1341_v58  ;;  %v1827_v0 = vmul.f32 %v4066_v59, %v1597_v60 }
 0x176   : > { %v1343_v1 = vpop.f32.mrf.mxu0  ;;  %v1599_v2 = vpop.f32.mrf.mxu1 }
 0x177   : > { %v3194_v3 = vpack.c.bf16 %v2025_v61, %v2025_v61  ;;  %v3258_v4 = vpack.c.bf16 %v2089_v62, %v2089_v62  ;;  %v1898_v5 = vadd.f32 %v4056_v44, %v1763_v63  ;;  %v1962_v6 = vadd.f32 %v4056_v44, %v1827_v0 }
 0x178   : > { %v1344_v7 = vpop.f32.mrf.mxu0  ;;  %v1600_v8 = vpop.f32.mrf.mxu1 }
 0x179   : > { %2666 = vst.msk [vmem:[%s3772_s16 + $0x7c] sm:$0xf] %vm2634_vm3, %v3194_v3  ;;  %2730 = vst.msk [vmem:[%s3772_s16 + $0x17c] sm:$0xf] %vm2634_vm3, %v3258_v4  ;;  %v2026_v9 = vmax.f32 %v1898_v5, 0.0  ;;  %v2090_v10 = vmax.f32 %v1962_v6, 0.0  ;;  %v1764_v11 = vmul.f32 %v4066_v59, %v1344_v7  ;;  %v1828_v12 = vmul.f32 %v4066_v59, %v1600_v8 }
 0x17a   : > { %v1346_v13 = vpop.f32.mrf.mxu0  ;;  %v1602_v14 = vpop.f32.mrf.mxu1 }
 0x17b   : > { %v3195_v15 = vpack.c.bf16 %v2026_v9, %v2026_v9  ;;  %v3259_v16 = vpack.c.bf16 %v2090_v10, %v2090_v10  ;;  %v1899_v17 = vadd.f32 %v4056_v44, %v1764_v11  ;;  %v1963_v18 = vadd.f32 %v4056_v44, %v1828_v12 }
 0x17c   : > { %v1349_v19 = vpop.f32.mrf.mxu0  ;;  %v1605_v20 = vpop.f32.mrf.mxu1 }
 0x17d   : > { %2667 = vst.msk [vmem:[%s3772_s16 + $0x80] sm:$0xf] %vm2634_vm3, %v3195_v15  ;;  %2731 = vst.msk [vmem:[%s3772_s16 + $0x180] sm:$0xf] %vm2634_vm3, %v3259_v16  ;;  %v2027_v21 = vmax.f32 %v1899_v17, 0.0  ;;  %v2091_v22 = vmax.f32 %v1963_v18, 0.0  ;;  %v1765_v23 = vmul.f32 %v4066_v59, %v1349_v19  ;;  %v1829_v24 = vmul.f32 %v4066_v59, %v1605_v20 }
 0x17e   : > { %v1351_v25 = vpop.f32.mrf.mxu0  ;;  %v1607_v26 = vpop.f32.mrf.mxu1 }
 0x17f   : > { %v3196_v27 = vpack.c.bf16 %v2027_v21, %v2027_v21  ;;  %v3260_v28 = vpack.c.bf16 %v2091_v22, %v2091_v22  ;;  %v1900_v29 = vadd.f32 %v4056_v44, %v1765_v23  ;;  %v1964_v30 = vadd.f32 %v4056_v44, %v1829_v24 }
 0x180   : > { %v1352_v31 = vpop.f32.mrf.mxu0  ;;  %v1608_v32 = vpop.f32.mrf.mxu1 }
 0x181   : > { %2668 = vst.msk [vmem:[%s3772_s16 + $0x84] sm:$0xf] %vm2634_vm3, %v3196_v27  ;;  %2732 = vst.msk [vmem:[%s3772_s16 + $0x184] sm:$0xf] %vm2634_vm3, %v3260_v28  ;;  %v2028_v33 = vmax.f32 %v1900_v29, 0.0  ;;  %v2092_v34 = vmax.f32 %v1964_v30, 0.0  ;;  %v1766_v35 = vmul.f32 %v4066_v59, %v1352_v31  ;;  %v1830_v36 = vmul.f32 %v4066_v59, %v1608_v32 }
 0x182   : > { %v1354_v37 = vpop.f32.mrf.mxu0  ;;  %v1610_v38 = vpop.f32.mrf.mxu1 }
 0x183   : > { %v3197_v39 = vpack.c.bf16 %v2028_v33, %v2028_v33  ;;  %v3261_v40 = vpack.c.bf16 %v2092_v34, %v2092_v34  ;;  %v1901_v41 = vadd.f32 %v4056_v44, %v1766_v35  ;;  %v1965_v42 = vadd.f32 %v4056_v44, %v1830_v36 }
 0x184   : > { %v1357_v43 = vpop.f32.mrf.mxu0  ;;  %v1613_v45 = vpop.f32.mrf.mxu1 }
 0x185   : > { %2669 = vst.msk [vmem:[%s3772_s16 + $0x88] sm:$0xf] %vm2634_vm3, %v3197_v39  ;;  %2733 = vst.msk [vmem:[%s3772_s16 + $0x188] sm:$0xf] %vm2634_vm3, %v3261_v40  ;;  %v2029_v46 = vmax.f32 %v1901_v41, 0.0  ;;  %v2093_v47 = vmax.f32 %v1965_v42, 0.0  ;;  %v1767_v57 = vmul.f32 %v4066_v59, %v1357_v43  ;;  %v1831_v48 = vmul.f32 %v4066_v59, %v1613_v45 }
 0x186   : > { %v1359_v49 = vpop.f32.mrf.mxu0  ;;  %v1615_v50 = vpop.f32.mrf.mxu1 }
 0x187   : > { %v3198_v51 = vpack.c.bf16 %v2029_v46, %v2029_v46  ;;  %v3262_v52 = vpack.c.bf16 %v2093_v47, %v2093_v47  ;;  %v1902_v53 = vadd.f32 %v4056_v44, %v1767_v57  ;;  %v1966_v54 = vadd.f32 %v4056_v44, %v1831_v48 }
 0x188   : > { %v1360_v55 = vpop.f32.mrf.mxu0  ;;  %v1616_v56 = vpop.f32.mrf.mxu1 }
 0x189   : > { %2670 = vst.msk [vmem:[%s3772_s16 + $0x8c] sm:$0xf] %vm2634_vm3, %v3198_v51  ;;  %2734 = vst.msk [vmem:[%s3772_s16 + $0x18c] sm:$0xf] %vm2634_vm3, %v3262_v52  ;;  %v2030_v58 = vmax.f32 %v1902_v53, 0.0  ;;  %v2094_v60 = vmax.f32 %v1966_v54, 0.0  ;;  %v1768_v61 = vmul.f32 %v4066_v59, %v1360_v55  ;;  %v1832_v62 = vmul.f32 %v4066_v59, %v1616_v56 }
 0x18a   : > { %v1362_v63 = vpop.f32.mrf.mxu0  ;;  %v1618_v0 = vpop.f32.mrf.mxu1 }
 0x18b   : > { %v3199_v1 = vpack.c.bf16 %v2030_v58, %v2030_v58  ;;  %v3263_v2 = vpack.c.bf16 %v2094_v60, %v2094_v60  ;;  %v1903_v3 = vadd.f32 %v4056_v44, %v1768_v61  ;;  %v1967_v4 = vadd.f32 %v4056_v44, %v1832_v62 }
 0x18c   : > { %v1365_v5 = vpop.f32.mrf.mxu0  ;;  %v1621_v6 = vpop.f32.mrf.mxu1 }
 0x18d   : > { %2671 = vst.msk [vmem:[%s3772_s16 + $0x90] sm:$0xf] %vm2634_vm3, %v3199_v1  ;;  %2735 = vst.msk [vmem:[%s3772_s16 + $0x190] sm:$0xf] %vm2634_vm3, %v3263_v2  ;;  %v2031_v7 = vmax.f32 %v1903_v3, 0.0  ;;  %v2095_v8 = vmax.f32 %v1967_v4, 0.0  ;;  %v1769_v9 = vmul.f32 %v4066_v59, %v1365_v5  ;;  %v1833_v10 = vmul.f32 %v4066_v59, %v1621_v6 }
 0x18e   : > { %v1367_v11 = vpop.f32.mrf.mxu0  ;;  %v1623_v12 = vpop.f32.mrf.mxu1 }
 0x18f   : > { %v3200_v13 = vpack.c.bf16 %v2031_v7, %v2031_v7  ;;  %v3264_v14 = vpack.c.bf16 %v2095_v8, %v2095_v8  ;;  %v1904_v15 = vadd.f32 %v4056_v44, %v1769_v9  ;;  %v1968_v16 = vadd.f32 %v4056_v44, %v1833_v10 }
 0x190   : > { %v1368_v17 = vpop.f32.mrf.mxu0  ;;  %v1624_v18 = vpop.f32.mrf.mxu1 }
 0x191   : > { %2672 = vst.msk [vmem:[%s3772_s16 + $0x94] sm:$0xf] %vm2634_vm3, %v3200_v13  ;;  %2736 = vst.msk [vmem:[%s3772_s16 + $0x194] sm:$0xf] %vm2634_vm3, %v3264_v14  ;;  %v2032_v19 = vmax.f32 %v1904_v15, 0.0  ;;  %v2096_v20 = vmax.f32 %v1968_v16, 0.0  ;;  %v1770_v21 = vmul.f32 %v4066_v59, %v1368_v17  ;;  %v1834_v22 = vmul.f32 %v4066_v59, %v1624_v18 }
 0x192   : > { %v1370_v23 = vpop.f32.mrf.mxu0  ;;  %v1626_v24 = vpop.f32.mrf.mxu1 }
 0x193   : > { %v3201_v25 = vpack.c.bf16 %v2032_v19, %v2032_v19  ;;  %v3265_v26 = vpack.c.bf16 %v2096_v20, %v2096_v20  ;;  %v1905_v27 = vadd.f32 %v4056_v44, %v1770_v21  ;;  %v1969_v28 = vadd.f32 %v4056_v44, %v1834_v22 }
 0x194   : > { %v1373_v29 = vpop.f32.mrf.mxu0  ;;  %v1629_v30 = vpop.f32.mrf.mxu1 }
 0x195   : > { %2673 = vst.msk [vmem:[%s3772_s16 + $0x98] sm:$0xf] %vm2634_vm3, %v3201_v25  ;;  %2737 = vst.msk [vmem:[%s3772_s16 + $0x198] sm:$0xf] %vm2634_vm3, %v3265_v26  ;;  %v2033_v31 = vmax.f32 %v1905_v27, 0.0  ;;  %v2097_v32 = vmax.f32 %v1969_v28, 0.0  ;;  %v1771_v33 = vmul.f32 %v4066_v59, %v1373_v29  ;;  %v1835_v34 = vmul.f32 %v4066_v59, %v1629_v30 }
 0x196   : > { %v1375_v35 = vpop.f32.mrf.mxu0  ;;  %v1631_v36 = vpop.f32.mrf.mxu1 }
 0x197   : > { %v3202_v37 = vpack.c.bf16 %v2033_v31, %v2033_v31  ;;  %v3266_v38 = vpack.c.bf16 %v2097_v32, %v2097_v32  ;;  %v1906_v39 = vadd.f32 %v4056_v44, %v1771_v33  ;;  %v1970_v40 = vadd.f32 %v4056_v44, %v1835_v34 }
 0x198   : > { %v1376_v41 = vpop.f32.mrf.mxu0  ;;  %v1632_v42 = vpop.f32.mrf.mxu1 }
 0x199   : > { %2674 = vst.msk [vmem:[%s3772_s16 + $0x9c] sm:$0xf] %vm2634_vm3, %v3202_v37  ;;  %2738 = vst.msk [vmem:[%s3772_s16 + $0x19c] sm:$0xf] %vm2634_vm3, %v3266_v38  ;;  %v2034_v43 = vmax.f32 %v1906_v39, 0.0  ;;  %v2098_v45 = vmax.f32 %v1970_v40, 0.0  ;;  %v1772_v46 = vmul.f32 %v4066_v59, %v1376_v41  ;;  %v1836_v47 = vmul.f32 %v4066_v59, %v1632_v42 }
 0x19a   : > { %v1378_v57 = vpop.f32.mrf.mxu0  ;;  %v1634_v48 = vpop.f32.mrf.mxu1 }
 0x19b   : > { %v3203_v49 = vpack.c.bf16 %v2034_v43, %v2034_v43  ;;  %v3267_v50 = vpack.c.bf16 %v2098_v45, %v2098_v45  ;;  %v1907_v51 = vadd.f32 %v4056_v44, %v1772_v46  ;;  %v1971_v52 = vadd.f32 %v4056_v44, %v1836_v47 }
 0x19c   : > { %v1381_v53 = vpop.f32.mrf.mxu0  ;;  %v1637_v54 = vpop.f32.mrf.mxu1 }
 0x19d   : > { %2675 = vst.msk [vmem:[%s3772_s16 + $0xa0] sm:$0xf] %vm2634_vm3, %v3203_v49  ;;  %2739 = vst.msk [vmem:[%s3772_s16 + $0x1a0] sm:$0xf] %vm2634_vm3, %v3267_v50  ;;  %v2035_v55 = vmax.f32 %v1907_v51, 0.0  ;;  %v2099_v56 = vmax.f32 %v1971_v52, 0.0  ;;  %v1773_v58 = vmul.f32 %v4066_v59, %v1381_v53  ;;  %v1837_v60 = vmul.f32 %v4066_v59, %v1637_v54 }
 0x19e   : > { %v1383_v61 = vpop.f32.mrf.mxu0  ;;  %v1639_v62 = vpop.f32.mrf.mxu1 }
 0x19f   : > { %v3204_v63 = vpack.c.bf16 %v2035_v55, %v2035_v55  ;;  %v3268_v0 = vpack.c.bf16 %v2099_v56, %v2099_v56  ;;  %v1908_v1 = vadd.f32 %v4056_v44, %v1773_v58  ;;  %v1972_v2 = vadd.f32 %v4056_v44, %v1837_v60 }
 0x1a0   : > { %v1384_v3 = vpop.f32.mrf.mxu0  ;;  %v1640_v4 = vpop.f32.mrf.mxu1 }
 0x1a1   : > { %2676 = vst.msk [vmem:[%s3772_s16 + $0xa4] sm:$0xf] %vm2634_vm3, %v3204_v63  ;;  %2740 = vst.msk [vmem:[%s3772_s16 + $0x1a4] sm:$0xf] %vm2634_vm3, %v3268_v0  ;;  %v2036_v5 = vmax.f32 %v1908_v1, 0.0  ;;  %v2100_v6 = vmax.f32 %v1972_v2, 0.0  ;;  %v1774_v7 = vmul.f32 %v4066_v59, %v1384_v3  ;;  %v1838_v8 = vmul.f32 %v4066_v59, %v1640_v4 }
 0x1a2   : > { %v1386_v9 = vpop.f32.mrf.mxu0  ;;  %v1642_v10 = vpop.f32.mrf.mxu1 }
 0x1a3   : > { %v3205_v11 = vpack.c.bf16 %v2036_v5, %v2036_v5  ;;  %v3269_v12 = vpack.c.bf16 %v2100_v6, %v2100_v6  ;;  %v1909_v13 = vadd.f32 %v4056_v44, %v1774_v7  ;;  %v1973_v14 = vadd.f32 %v4056_v44, %v1838_v8 }
 0x1a4   : > { %v1389_v15 = vpop.f32.mrf.mxu0  ;;  %v1645_v16 = vpop.f32.mrf.mxu1 }
 0x1a5   : > { %2677 = vst.msk [vmem:[%s3772_s16 + $0xa8] sm:$0xf] %vm2634_vm3, %v3205_v11  ;;  %2741 = vst.msk [vmem:[%s3772_s16 + $0x1a8] sm:$0xf] %vm2634_vm3, %v3269_v12  ;;  %v2037_v17 = vmax.f32 %v1909_v13, 0.0  ;;  %v2101_v18 = vmax.f32 %v1973_v14, 0.0  ;;  %v1775_v19 = vmul.f32 %v4066_v59, %v1389_v15  ;;  %v1839_v20 = vmul.f32 %v4066_v59, %v1645_v16 }
 0x1a6   : > { %v1391_v21 = vpop.f32.mrf.mxu0  ;;  %v1647_v22 = vpop.f32.mrf.mxu1 }
 0x1a7   : > { %v3206_v23 = vpack.c.bf16 %v2037_v17, %v2037_v17  ;;  %v3270_v24 = vpack.c.bf16 %v2101_v18, %v2101_v18  ;;  %v1910_v25 = vadd.f32 %v4056_v44, %v1775_v19  ;;  %v1974_v26 = vadd.f32 %v4056_v44, %v1839_v20 }
 0x1a8   : > { %v1392_v27 = vpop.f32.mrf.mxu0  ;;  %v1648_v28 = vpop.f32.mrf.mxu1 }
 0x1a9   : > { %2678 = vst.msk [vmem:[%s3772_s16 + $0xac] sm:$0xf] %vm2634_vm3, %v3206_v23  ;;  %2742 = vst.msk [vmem:[%s3772_s16 + $0x1ac] sm:$0xf] %vm2634_vm3, %v3270_v24  ;;  %v2038_v29 = vmax.f32 %v1910_v25, 0.0  ;;  %v2102_v30 = vmax.f32 %v1974_v26, 0.0  ;;  %v1776_v31 = vmul.f32 %v4066_v59, %v1392_v27  ;;  %v1840_v32 = vmul.f32 %v4066_v59, %v1648_v28 }
 0x1aa   : > { %v1394_v33 = vpop.f32.mrf.mxu0  ;;  %v1650_v34 = vpop.f32.mrf.mxu1 }
 0x1ab   : > { %v3207_v35 = vpack.c.bf16 %v2038_v29, %v2038_v29  ;;  %v3271_v36 = vpack.c.bf16 %v2102_v30, %v2102_v30  ;;  %v1911_v37 = vadd.f32 %v4056_v44, %v1776_v31  ;;  %v1975_v38 = vadd.f32 %v4056_v44, %v1840_v32 }
 0x1ac   : > { %v1397_v39 = vpop.f32.mrf.mxu0  ;;  %v1653_v40 = vpop.f32.mrf.mxu1 }
 0x1ad   : > { %2679 = vst.msk [vmem:[%s3772_s16 + $0xb0] sm:$0xf] %vm2634_vm3, %v3207_v35  ;;  %2743 = vst.msk [vmem:[%s3772_s16 + $0x1b0] sm:$0xf] %vm2634_vm3, %v3271_v36  ;;  %v2039_v41 = vmax.f32 %v1911_v37, 0.0  ;;  %v2103_v42 = vmax.f32 %v1975_v38, 0.0  ;;  %v1777_v43 = vmul.f32 %v4066_v59, %v1397_v39  ;;  %v1841_v45 = vmul.f32 %v4066_v59, %v1653_v40 }
 0x1ae   : > { %v1399_v46 = vpop.f32.mrf.mxu0  ;;  %v1655_v47 = vpop.f32.mrf.mxu1 }
 0x1af   : > { %v3208_v57 = vpack.c.bf16 %v2039_v41, %v2039_v41  ;;  %v3272_v48 = vpack.c.bf16 %v2103_v42, %v2103_v42  ;;  %v1912_v49 = vadd.f32 %v4056_v44, %v1777_v43  ;;  %v1976_v50 = vadd.f32 %v4056_v44, %v1841_v45 }
 0x1b0   : > { %v1400_v51 = vpop.f32.mrf.mxu0  ;;  %v1656_v52 = vpop.f32.mrf.mxu1 }
 0x1b1   : > { %2680 = vst.msk [vmem:[%s3772_s16 + $0xb4] sm:$0xf] %vm2634_vm3, %v3208_v57  ;;  %2744 = vst.msk [vmem:[%s3772_s16 + $0x1b4] sm:$0xf] %vm2634_vm3, %v3272_v48  ;;  %v2040_v53 = vmax.f32 %v1912_v49, 0.0  ;;  %v2104_v54 = vmax.f32 %v1976_v50, 0.0  ;;  %v1778_v55 = vmul.f32 %v4066_v59, %v1400_v51  ;;  %v1842_v56 = vmul.f32 %v4066_v59, %v1656_v52 }
 0x1b2   : > { %v1402_v58 = vpop.f32.mrf.mxu0  ;;  %v1658_v60 = vpop.f32.mrf.mxu1 }
 0x1b3   : > { %v3209_v61 = vpack.c.bf16 %v2040_v53, %v2040_v53  ;;  %v3273_v62 = vpack.c.bf16 %v2104_v54, %v2104_v54  ;;  %v1913_v63 = vadd.f32 %v4056_v44, %v1778_v55  ;;  %v1977_v0 = vadd.f32 %v4056_v44, %v1842_v56 }
 0x1b4   : > { %v1405_v1 = vpop.f32.mrf.mxu0  ;;  %v1661_v2 = vpop.f32.mrf.mxu1 }
 0x1b5   : > { %2681 = vst.msk [vmem:[%s3772_s16 + $0xb8] sm:$0xf] %vm2634_vm3, %v3209_v61  ;;  %2745 = vst.msk [vmem:[%s3772_s16 + $0x1b8] sm:$0xf] %vm2634_vm3, %v3273_v62  ;;  %v2041_v3 = vmax.f32 %v1913_v63, 0.0  ;;  %v2105_v4 = vmax.f32 %v1977_v0, 0.0  ;;  %v1779_v5 = vmul.f32 %v4066_v59, %v1405_v1  ;;  %v1843_v6 = vmul.f32 %v4066_v59, %v1661_v2 }
 0x1b6   : > { %v1407_v7 = vpop.f32.mrf.mxu0  ;;  %v1663_v8 = vpop.f32.mrf.mxu1 }
 0x1b7   : > { %v3210_v9 = vpack.c.bf16 %v2041_v3, %v2041_v3  ;;  %v3274_v10 = vpack.c.bf16 %v2105_v4, %v2105_v4  ;;  %v1914_v11 = vadd.f32 %v4056_v44, %v1779_v5  ;;  %v1978_v12 = vadd.f32 %v4056_v44, %v1843_v6 }
 0x1b8   : > { %v1408_v13 = vpop.f32.mrf.mxu0  ;;  %v1664_v14 = vpop.f32.mrf.mxu1 }
 0x1b9   : > { %2682 = vst.msk [vmem:[%s3772_s16 + $0xbc] sm:$0xf] %vm2634_vm3, %v3210_v9  ;;  %2746 = vst.msk [vmem:[%s3772_s16 + $0x1bc] sm:$0xf] %vm2634_vm3, %v3274_v10  ;;  %v2042_v15 = vmax.f32 %v1914_v11, 0.0  ;;  %v2106_v16 = vmax.f32 %v1978_v12, 0.0  ;;  %v1780_v17 = vmul.f32 %v4066_v59, %v1408_v13  ;;  %v1844_v18 = vmul.f32 %v4066_v59, %v1664_v14 }
 0x1ba   : > { %v1410_v19 = vpop.f32.mrf.mxu0  ;;  %v1666_v20 = vpop.f32.mrf.mxu1 }
 0x1bb   : > { %v3211_v21 = vpack.c.bf16 %v2042_v15, %v2042_v15  ;;  %v3275_v22 = vpack.c.bf16 %v2106_v16, %v2106_v16  ;;  %v1915_v23 = vadd.f32 %v4056_v44, %v1780_v17  ;;  %v1979_v24 = vadd.f32 %v4056_v44, %v1844_v18 }
 0x1bc   : > { %v1413_v25 = vpop.f32.mrf.mxu0  ;;  %v1669_v26 = vpop.f32.mrf.mxu1 }
 0x1bd   : > { %2683 = vst.msk [vmem:[%s3772_s16 + $0xc0] sm:$0xf] %vm2634_vm3, %v3211_v21  ;;  %2747 = vst.msk [vmem:[%s3772_s16 + $0x1c0] sm:$0xf] %vm2634_vm3, %v3275_v22  ;;  %v2043_v27 = vmax.f32 %v1915_v23, 0.0  ;;  %v2107_v28 = vmax.f32 %v1979_v24, 0.0  ;;  %v1781_v29 = vmul.f32 %v4066_v59, %v1413_v25  ;;  %v1845_v30 = vmul.f32 %v4066_v59, %v1669_v26 }
 0x1be   : > { %v1415_v31 = vpop.f32.mrf.mxu0  ;;  %v1671_v32 = vpop.f32.mrf.mxu1 }
 0x1bf   : > { %v3212_v33 = vpack.c.bf16 %v2043_v27, %v2043_v27  ;;  %v3276_v34 = vpack.c.bf16 %v2107_v28, %v2107_v28  ;;  %v1916_v35 = vadd.f32 %v4056_v44, %v1781_v29  ;;  %v1980_v36 = vadd.f32 %v4056_v44, %v1845_v30 }
 0x1c0   : > { %v1416_v37 = vpop.f32.mrf.mxu0  ;;  %v1672_v38 = vpop.f32.mrf.mxu1 }
 0x1c1   : > { %2684 = vst.msk [vmem:[%s3772_s16 + $0xc4] sm:$0xf] %vm2634_vm3, %v3212_v33  ;;  %2748 = vst.msk [vmem:[%s3772_s16 + $0x1c4] sm:$0xf] %vm2634_vm3, %v3276_v34  ;;  %v2044_v39 = vmax.f32 %v1916_v35, 0.0  ;;  %v2108_v40 = vmax.f32 %v1980_v36, 0.0  ;;  %v1782_v41 = vmul.f32 %v4066_v59, %v1416_v37  ;;  %v1846_v42 = vmul.f32 %v4066_v59, %v1672_v38 }
 0x1c2   : > { %v1418_v43 = vpop.f32.mrf.mxu0  ;;  %v1674_v45 = vpop.f32.mrf.mxu1 }
 0x1c3   : > { %v3213_v46 = vpack.c.bf16 %v2044_v39, %v2044_v39  ;;  %v3277_v47 = vpack.c.bf16 %v2108_v40, %v2108_v40  ;;  %v1917_v57 = vadd.f32 %v4056_v44, %v1782_v41  ;;  %v1981_v48 = vadd.f32 %v4056_v44, %v1846_v42 }
 0x1c4   : > { %v1421_v49 = vpop.f32.mrf.mxu0  ;;  %v1677_v50 = vpop.f32.mrf.mxu1 }
 0x1c5   : > { %2685 = vst.msk [vmem:[%s3772_s16 + $0xc8] sm:$0xf] %vm2634_vm3, %v3213_v46  ;;  %2749 = vst.msk [vmem:[%s3772_s16 + $0x1c8] sm:$0xf] %vm2634_vm3, %v3277_v47  ;;  %v2045_v51 = vmax.f32 %v1917_v57, 0.0  ;;  %v2109_v52 = vmax.f32 %v1981_v48, 0.0  ;;  %v1783_v53 = vmul.f32 %v4066_v59, %v1421_v49  ;;  %v1847_v54 = vmul.f32 %v4066_v59, %v1677_v50 }
 0x1c6   : > { %v1423_v55 = vpop.f32.mrf.mxu0  ;;  %v1679_v56 = vpop.f32.mrf.mxu1 }
 0x1c7   : > { %v3214_v58 = vpack.c.bf16 %v2045_v51, %v2045_v51  ;;  %v3278_v60 = vpack.c.bf16 %v2109_v52, %v2109_v52  ;;  %v1918_v61 = vadd.f32 %v4056_v44, %v1783_v53  ;;  %v1982_v62 = vadd.f32 %v4056_v44, %v1847_v54 }
 0x1c8   : > { %v1424_v63 = vpop.f32.mrf.mxu0  ;;  %v1680_v0 = vpop.f32.mrf.mxu1 }
 0x1c9   : > { %2686 = vst.msk [vmem:[%s3772_s16 + $0xcc] sm:$0xf] %vm2634_vm3, %v3214_v58  ;;  %2750 = vst.msk [vmem:[%s3772_s16 + $0x1cc] sm:$0xf] %vm2634_vm3, %v3278_v60  ;;  %v2046_v1 = vmax.f32 %v1918_v61, 0.0  ;;  %v2110_v2 = vmax.f32 %v1982_v62, 0.0  ;;  %v1784_v3 = vmul.f32 %v4066_v59, %v1424_v63  ;;  %v1848_v4 = vmul.f32 %v4066_v59, %v1680_v0 }
 0x1ca   : > { %v1426_v5 = vpop.f32.mrf.mxu0  ;;  %v1682_v6 = vpop.f32.mrf.mxu1 }
 0x1cb   : > { %v3215_v7 = vpack.c.bf16 %v2046_v1, %v2046_v1  ;;  %v3279_v8 = vpack.c.bf16 %v2110_v2, %v2110_v2  ;;  %v1919_v9 = vadd.f32 %v4056_v44, %v1784_v3  ;;  %v1983_v10 = vadd.f32 %v4056_v44, %v1848_v4 }
 0x1cc   : > { %v1429_v11 = vpop.f32.mrf.mxu0  ;;  %v1685_v12 = vpop.f32.mrf.mxu1 }
 0x1cd   : > { %2687 = vst.msk [vmem:[%s3772_s16 + $0xd0] sm:$0xf] %vm2634_vm3, %v3215_v7  ;;  %2751 = vst.msk [vmem:[%s3772_s16 + $0x1d0] sm:$0xf] %vm2634_vm3, %v3279_v8  ;;  %v2047_v13 = vmax.f32 %v1919_v9, 0.0  ;;  %v2111_v14 = vmax.f32 %v1983_v10, 0.0  ;;  %v1785_v15 = vmul.f32 %v4066_v59, %v1429_v11  ;;  %v1849_v16 = vmul.f32 %v4066_v59, %v1685_v12 }
 0x1ce   : > { %v1431_v17 = vpop.f32.mrf.mxu0  ;;  %v1687_v18 = vpop.f32.mrf.mxu1 }
 0x1cf   : > { %v3216_v19 = vpack.c.bf16 %v2047_v13, %v2047_v13  ;;  %v3280_v20 = vpack.c.bf16 %v2111_v14, %v2111_v14  ;;  %v1920_v21 = vadd.f32 %v4056_v44, %v1785_v15  ;;  %v1984_v22 = vadd.f32 %v4056_v44, %v1849_v16 }
 0x1d0   : > { %v1432_v23 = vpop.f32.mrf.mxu0  ;;  %v1688_v24 = vpop.f32.mrf.mxu1 }
 0x1d1   : > { %2688 = vst.msk [vmem:[%s3772_s16 + $0xd4] sm:$0xf] %vm2634_vm3, %v3216_v19  ;;  %2752 = vst.msk [vmem:[%s3772_s16 + $0x1d4] sm:$0xf] %vm2634_vm3, %v3280_v20  ;;  %v2048_v25 = vmax.f32 %v1920_v21, 0.0  ;;  %v2112_v26 = vmax.f32 %v1984_v22, 0.0  ;;  %v1786_v27 = vmul.f32 %v4066_v59, %v1432_v23  ;;  %v1850_v28 = vmul.f32 %v4066_v59, %v1688_v24 }
 0x1d2   : > { %v1434_v29 = vpop.f32.mrf.mxu0  ;;  %v1690_v30 = vpop.f32.mrf.mxu1 }
 0x1d3   : > { %v3217_v31 = vpack.c.bf16 %v2048_v25, %v2048_v25  ;;  %v3281_v32 = vpack.c.bf16 %v2112_v26, %v2112_v26  ;;  %v1921_v33 = vadd.f32 %v4056_v44, %v1786_v27  ;;  %v1985_v34 = vadd.f32 %v4056_v44, %v1850_v28 }
 0x1d4   : > { %v1437_v35 = vpop.f32.mrf.mxu0  ;;  %v1693_v36 = vpop.f32.mrf.mxu1 }
 0x1d5   : > { %2689 = vst.msk [vmem:[%s3772_s16 + $0xd8] sm:$0xf] %vm2634_vm3, %v3217_v31  ;;  %2753 = vst.msk [vmem:[%s3772_s16 + $0x1d8] sm:$0xf] %vm2634_vm3, %v3281_v32  ;;  %v2049_v37 = vmax.f32 %v1921_v33, 0.0  ;;  %v2113_v38 = vmax.f32 %v1985_v34, 0.0  ;;  %v1787_v39 = vmul.f32 %v4066_v59, %v1437_v35  ;;  %v1851_v40 = vmul.f32 %v4066_v59, %v1693_v36 }
 0x1d6   : > { %v1439_v41 = vpop.f32.mrf.mxu0  ;;  %v1695_v42 = vpop.f32.mrf.mxu1 }
 0x1d7   : > { %v3218_v43 = vpack.c.bf16 %v2049_v37, %v2049_v37  ;;  %v3282_v45 = vpack.c.bf16 %v2113_v38, %v2113_v38  ;;  %v1922_v46 = vadd.f32 %v4056_v44, %v1787_v39  ;;  %v1986_v47 = vadd.f32 %v4056_v44, %v1851_v40 }
 0x1d8   : > { %v1440_v57 = vpop.f32.mrf.mxu0  ;;  %v1696_v48 = vpop.f32.mrf.mxu1 }
 0x1d9   : > { %2690 = vst.msk [vmem:[%s3772_s16 + $0xdc] sm:$0xf] %vm2634_vm3, %v3218_v43  ;;  %2754 = vst.msk [vmem:[%s3772_s16 + $0x1dc] sm:$0xf] %vm2634_vm3, %v3282_v45  ;;  %v2050_v49 = vmax.f32 %v1922_v46, 0.0  ;;  %v2114_v50 = vmax.f32 %v1986_v47, 0.0  ;;  %v1788_v51 = vmul.f32 %v4066_v59, %v1440_v57  ;;  %v1852_v52 = vmul.f32 %v4066_v59, %v1696_v48 }
 0x1da   : > { %v1442_v53 = vpop.f32.mrf.mxu0  ;;  %v1698_v54 = vpop.f32.mrf.mxu1 }
 0x1db   : > { %v3219_v55 = vpack.c.bf16 %v2050_v49, %v2050_v49  ;;  %v3283_v56 = vpack.c.bf16 %v2114_v50, %v2114_v50  ;;  %v1923_v58 = vadd.f32 %v4056_v44, %v1788_v51  ;;  %v1987_v60 = vadd.f32 %v4056_v44, %v1852_v52 }
 0x1dc   : > { %v1445_v61 = vpop.f32.mrf.mxu0  ;;  %v1701_v62 = vpop.f32.mrf.mxu1 }
 0x1dd   : > { %2691 = vst.msk [vmem:[%s3772_s16 + $0xe0] sm:$0xf] %vm2634_vm3, %v3219_v55  ;;  %2755 = vst.msk [vmem:[%s3772_s16 + $0x1e0] sm:$0xf] %vm2634_vm3, %v3283_v56  ;;  %v2051_v63 = vmax.f32 %v1923_v58, 0.0  ;;  %v2115_v0 = vmax.f32 %v1987_v60, 0.0  ;;  %v1789_v1 = vmul.f32 %v4066_v59, %v1445_v61  ;;  %v1853_v2 = vmul.f32 %v4066_v59, %v1701_v62 }
 0x1de   : > { %v1447_v3 = vpop.f32.mrf.mxu0  ;;  %v1703_v4 = vpop.f32.mrf.mxu1 }
 0x1df   : > { %v3220_v5 = vpack.c.bf16 %v2051_v63, %v2051_v63  ;;  %v3284_v6 = vpack.c.bf16 %v2115_v0, %v2115_v0  ;;  %v1924_v7 = vadd.f32 %v4056_v44, %v1789_v1  ;;  %v1988_v8 = vadd.f32 %v4056_v44, %v1853_v2 }
 0x1e0   : > { %v1448_v9 = vpop.f32.mrf.mxu0  ;;  %v1704_v10 = vpop.f32.mrf.mxu1 }
 0x1e1   : > { %2692 = vst.msk [vmem:[%s3772_s16 + $0xe4] sm:$0xf] %vm2634_vm3, %v3220_v5  ;;  %2756 = vst.msk [vmem:[%s3772_s16 + $0x1e4] sm:$0xf] %vm2634_vm3, %v3284_v6  ;;  %v2052_v11 = vmax.f32 %v1924_v7, 0.0  ;;  %v2116_v12 = vmax.f32 %v1988_v8, 0.0  ;;  %v1790_v13 = vmul.f32 %v4066_v59, %v1448_v9  ;;  %v1854_v14 = vmul.f32 %v4066_v59, %v1704_v10 }
 0x1e2   : > { %v1450_v15 = vpop.f32.mrf.mxu0  ;;  %v1706_v16 = vpop.f32.mrf.mxu1 }
 0x1e3   : > { %v3221_v17 = vpack.c.bf16 %v2052_v11, %v2052_v11  ;;  %v3285_v18 = vpack.c.bf16 %v2116_v12, %v2116_v12  ;;  %v1925_v19 = vadd.f32 %v4056_v44, %v1790_v13  ;;  %v1989_v20 = vadd.f32 %v4056_v44, %v1854_v14 }
 0x1e4   : > { %v1453_v21 = vpop.f32.mrf.mxu0  ;;  %v1709_v22 = vpop.f32.mrf.mxu1 }
 0x1e5   : > { %2693 = vst.msk [vmem:[%s3772_s16 + $0xe8] sm:$0xf] %vm2634_vm3, %v3221_v17  ;;  %2757 = vst.msk [vmem:[%s3772_s16 + $0x1e8] sm:$0xf] %vm2634_vm3, %v3285_v18  ;;  %v2053_v23 = vmax.f32 %v1925_v19, 0.0  ;;  %v2117_v24 = vmax.f32 %v1989_v20, 0.0  ;;  %v1791_v25 = vmul.f32 %v4066_v59, %v1453_v21  ;;  %v1855_v26 = vmul.f32 %v4066_v59, %v1709_v22 }
 0x1e6   : > { %v1455_v27 = vpop.f32.mrf.mxu0  ;;  %v1711_v28 = vpop.f32.mrf.mxu1 }
 0x1e7   : > { %v3222_v29 = vpack.c.bf16 %v2053_v23, %v2053_v23  ;;  %v3286_v30 = vpack.c.bf16 %v2117_v24, %v2117_v24  ;;  %v1926_v31 = vadd.f32 %v4056_v44, %v1791_v25  ;;  %v1990_v32 = vadd.f32 %v4056_v44, %v1855_v26 }
 0x1e8   : > { %v1456_v33 = vpop.f32.mrf.mxu0  ;;  %v1712_v34 = vpop.f32.mrf.mxu1 }
 0x1e9   : > { %2694 = vst.msk [vmem:[%s3772_s16 + $0xec] sm:$0xf] %vm2634_vm3, %v3222_v29  ;;  %2758 = vst.msk [vmem:[%s3772_s16 + $0x1ec] sm:$0xf] %vm2634_vm3, %v3286_v30  ;;  %v2054_v35 = vmax.f32 %v1926_v31, 0.0  ;;  %v2118_v36 = vmax.f32 %v1990_v32, 0.0  ;;  %v1792_v37 = vmul.f32 %v4066_v59, %v1456_v33  ;;  %v1856_v38 = vmul.f32 %v4066_v59, %v1712_v34 }
 0x1ea   : > { %v1458_v39 = vpop.f32.mrf.mxu0  ;;  %v1714_v40 = vpop.f32.mrf.mxu1 }
 0x1eb   : > { %v3223_v41 = vpack.c.bf16 %v2054_v35, %v2054_v35  ;;  %v3287_v42 = vpack.c.bf16 %v2118_v36, %v2118_v36  ;;  %v1927_v43 = vadd.f32 %v4056_v44, %v1792_v37  ;;  %v1991_v45 = vadd.f32 %v4056_v44, %v1856_v38 }
 0x1ec   : > { %v1461_v46 = vpop.f32.mrf.mxu0  ;;  %v1717_v47 = vpop.f32.mrf.mxu1 }
 0x1ed   : > { %2695 = vst.msk [vmem:[%s3772_s16 + $0xf0] sm:$0xf] %vm2634_vm3, %v3223_v41  ;;  %2759 = vst.msk [vmem:[%s3772_s16 + $0x1f0] sm:$0xf] %vm2634_vm3, %v3287_v42  ;;  %v2055_v57 = vmax.f32 %v1927_v43, 0.0  ;;  %v2119_v48 = vmax.f32 %v1991_v45, 0.0  ;;  %v1793_v49 = vmul.f32 %v4066_v59, %v1461_v46  ;;  %v1857_v50 = vmul.f32 %v4066_v59, %v1717_v47 }
 0x1ee   : > { %v1463_v51 = vpop.f32.mrf.mxu0  ;;  %v1719_v52 = vpop.f32.mrf.mxu1 }
 0x1ef   : > { %v3224_v53 = vpack.c.bf16 %v2055_v57, %v2055_v57  ;;  %v3288_v54 = vpack.c.bf16 %v2119_v48, %v2119_v48  ;;  %v1928_v55 = vadd.f32 %v4056_v44, %v1793_v49  ;;  %v1992_v56 = vadd.f32 %v4056_v44, %v1857_v50 }
 0x1f0   : > { %v1464_v58 = vpop.f32.mrf.mxu0  ;;  %v1720_v60 = vpop.f32.mrf.mxu1 }
 0x1f1   : > { %2696 = vst.msk [vmem:[%s3772_s16 + $0xf4] sm:$0xf] %vm2634_vm3, %v3224_v53  ;;  %2760 = vst.msk [vmem:[%s3772_s16 + $0x1f4] sm:$0xf] %vm2634_vm3, %v3288_v54  ;;  %v2056_v61 = vmax.f32 %v1928_v55, 0.0  ;;  %v2120_v62 = vmax.f32 %v1992_v56, 0.0  ;;  %v1794_v63 = vmul.f32 %v4066_v59, %v1464_v58  ;;  %v1858_v0 = vmul.f32 %v4066_v59, %v1720_v60 }
 0x1f2   : > { %v1466_v1 = vpop.f32.mrf.mxu0  ;;  %v1722_v2 = vpop.f32.mrf.mxu1 }
 0x1f3   : > { %v3225_v3 = vpack.c.bf16 %v2056_v61, %v2056_v61  ;;  %v3289_v4 = vpack.c.bf16 %v2120_v62, %v2120_v62  ;;  %v1929_v5 = vadd.f32 %v4056_v44, %v1794_v63  ;;  %v1993_v6 = vadd.f32 %v4056_v44, %v1858_v0 }
 0x1f5   : > { %2697 = vst.msk [vmem:[%s3772_s16 + $0xf8] sm:$0xf] %vm2634_vm3, %v3225_v3  ;;  %2761 = vst.msk [vmem:[%s3772_s16 + $0x1f8] sm:$0xf] %vm2634_vm3, %v3289_v4  ;;  %v2057_v7 = vmax.f32 %v1929_v5, 0.0  ;;  %v2121_v8 = vmax.f32 %v1993_v6, 0.0 }
 0x1f7   : > { %v3226_v9 = vpack.c.bf16 %v2057_v7, %v2057_v7  ;;  %v3290_v10 = vpack.c.bf16 %v2121_v8, %v2121_v8 }
 0x1f9   : > { %2698 = vst.msk [vmem:[%s3772_s16 + $0xfc] sm:$0xf] %vm2634_vm3, %v3226_v9  ;;  %2762 = vst.msk [vmem:[%s3772_s16 + $0x1fc] sm:$0xf] %vm2634_vm3, %v3290_v10 }
 0x1fa PF: > { %s14_s15 = sadd.s32 1, %s3515_s15  }
 0x1fb   : > { %p11_p4 = scmp.ge.s32.totalorder %s14_s15, 4  }
 0x1fd   :  { %13 = sbr.rel (!%p11_p4) target bundleno = 1 (0x1), region = 66 }

</bundles_post_ra>
